<compile_context>
chip_gen: v7x
topology: tpu7x:2x2x1
jax: 0.10.0
libtpu: 0.0.40
codegen_flags: <defaults>
</compile_context>

<pallas_src>
import functools

import jax
import jax.numpy as jnp
from jax.experimental import pallas as pl
from jax.experimental.pallas import tpu as pltpu

F32 = jnp.float32

# module hyper-parameters (from the PyTorch source)
NUM_INPUTS = 256     # num_inputs_img
NUM_HIDDEN = 5       # num_hidden
NUM_OUT = 10         # num_outputs -> the W axis of the 5-D tensor
EMBED_DIM = 3        # embed_dims (= C)
HEAD_OUT = 512       # final nn.Linear(3, 512)
BETA = 0.95          # snn.Leaky beta (irrelevant: num_steps = 1 and mem0 = 0)

CPAD = 8             # channel axis padded to one sublane group
LANE = 128           # native lane width


# --------------------------------------------------------------------------
# Fused kernel: one grid step = `bb` batch elements running
# patch_embed -> spiking attention Block -> channel mean -> Linear(3, 512).
# --------------------------------------------------------------------------
def fused_kernel(x_ref, w1_ref, b1_ref, w2_ref, b2_ref,
                 wqkv_ref, sqkv_ref, wproj_ref, sproj_ref,
                 mask_ref, sel_ref, wl_ref, bl_ref,
                 out_ref, xin_scr, *, C, H, bb, chp):
    M8 = bb * CPAD
    NL = H * LANE

    # ---- stage 1: Pulse_transformation, batched over the whole block ------
    # mem0 = 0 and num_steps == 1, so snn.Leaky reduces to spk = (cur > 1).
    xb = x_ref[...]                                            # (bb*chp, 256)
    cur1 = jnp.dot(xb, w1_ref[...], preferred_element_type=F32) + b1_ref[...]
    spk1 = jnp.where(cur1 > 1.0, 1.0, 0.0)
    cur2 = jnp.dot(spk1, w2_ref[...], preferred_element_type=F32) + b2_ref[...]
    spk2 = jnp.where(cur2 > 1.0, 1.0, 0.0)                     # (bb*chp, 128)
    # Columns NUM_OUT..127 of spk2 are exactly 0 (zero-padded fc2 params).

    # ---- relayout (b,h,c)-major rows -> channel-major sublane-stacked xin --
    # Zero ONLY the pad-channel rows, every grid step (scratch is stale across
    # steps; no program_id==0 guard -> safe with 'parallel' semantics and
    # megacore grid sharding).
    zpad = jnp.zeros((CPAD - C, NL), F32)
    for b in range(bb):
        xin_scr[pl.ds(b * CPAD + C, CPAD - C), :] = zpad
    # x was transposed to (B, H, C, Ni) in the wrapper, so each copy below is
    # a contiguous (C, 128) block of the spk2 value (no staging buffer).
    for b in range(bb):
        for h in range(H):
            r0 = b * chp + h * C
            xin_scr[pl.ds(b * CPAD, C), pl.ds(h * LANE, LANE)] = spk2[r0:r0 + C, :]
    xin = xin_scr[...]                                         # (bb*8, H*128)

    # ---- stage 2: Pulse_extraction (spiking self-attention), batched -------
    # 1x1 Conv1d + inference-mode BatchNorm1d folded into block-diagonal
    # weights -> one matmul for the whole block.  MultiStepLIFNode(tau=2,
    # v_reset=0): v = y/2, spike = (v >= v_threshold).
    y = jnp.dot(wqkv_ref[...], xin, preferred_element_type=F32) + sqkv_ref[...]
    qkv = jnp.where(y >= 2.0, 1.0, 0.0)                        # v_th = 1
    q = qkv[0:M8]
    k = qkv[M8:2 * M8]
    v = qkv[2 * M8:3 * M8]

    # Reference: q @ (k^T @ v) * 0.125 per element.  (q @ k^T) @ v is
    # bit-identical here (0/1 spikes -> all partial sums are small exact
    # integers under either association).  The whole block is two full-height
    # matmuls; a block-diagonal 0/1 mask kills cross-element terms.  f32
    # throughout (no bf16 exactness caveat).
    qk = jax.lax.dot_general(q, k, (((1,), (1,)), ((), ())),
                             preferred_element_type=F32) * mask_ref[...]
    attn = jnp.dot(qk, v, preferred_element_type=F32) * 0.125
    attn_spk = jnp.where(attn >= 1.0, 1.0, 0.0)                # attn_lif, v_th=0.5

    p = jnp.dot(wproj_ref[...], attn_spk,
                preferred_element_type=F32) + sproj_ref[...]
    v1 = 0.5 * p                                               # proj_lif, 1st call
    spk_a = jnp.where(v1 >= 1.0, 1.0, 0.0)
    v2 = 0.5 * ((1.0 - spk_a) * v1 + spk_a)                    # proj_lif, 2nd call
    x_attn = jnp.where(v2 >= 1.0, 1.0, 0.0)
    xres = xin + x_attn                                        # Block residual

    # ---- stage 3: x.flatten(3).mean(3) + Linear(3, 512), one matmul --------
    rowsum = jnp.sum(xres, axis=1, keepdims=True)              # (bb*8, 1)
    g = rowsum * wl_ref[...]                                   # wl tiled, 1/N folded
    out_ref[...] = jnp.dot(sel_ref[...], g,
                           preferred_element_type=F32) + bl_ref[...]


# --------------------------------------------------------------------------
# Parameter setup (deterministic, in-script)
# --------------------------------------------------------------------------
def init_params(key):
    ks = jax.random.split(key, 16)
    p = {}
    p["fc1_w"] = 0.2 * jax.random.normal(ks[0], (NUM_HIDDEN, NUM_INPUTS), F32)
    p["fc1_b"] = 0.1 * jax.random.normal(ks[1], (NUM_HIDDEN,), F32)
    p["fc2_w"] = 1.5 * jax.random.normal(ks[2], (NUM_OUT, NUM_HIDDEN), F32)
    p["fc2_b"] = 0.1 * jax.random.normal(ks[3], (NUM_OUT,), F32)
    for i, name in enumerate(("q", "k", "v", "proj")):
        p[f"{name}_w"] = 1.5 * jax.random.normal(ks[4 + i], (EMBED_DIM, EMBED_DIM), F32)
        kb = jax.random.split(ks[8 + i], 4)
        p[f"{name}_bn_gamma"] = 1.0 + 0.1 * jax.random.normal(kb[0], (EMBED_DIM,), F32)
        p[f"{name}_bn_beta"] = 0.1 * jax.random.normal(kb[1], (EMBED_DIM,), F32)
        p[f"{name}_bn_mean"] = 0.1 * jax.random.normal(kb[2], (EMBED_DIM,), F32)
        p[f"{name}_bn_var"] = 1.0 + 0.1 * jax.random.uniform(kb[3], (EMBED_DIM,), F32)
    p["proj_b"] = 0.1 * jax.random.normal(ks[12], (EMBED_DIM,), F32)
    p["lin_w"] = 0.5 * jax.random.normal(ks[13], (HEAD_OUT, EMBED_DIM), F32)
    p["lin_b"] = 0.1 * jax.random.normal(ks[14], (HEAD_OUT,), F32)
    return p


def _fold_conv_bn(conv_w, conv_b, gamma, beta_, mean, var, eps=1e-5):
    # TODO(synk): BatchNorm1d is folded in inference mode (running stats); a
    # freshly constructed PyTorch module in train() mode would use batch stats.
    sc = gamma / jnp.sqrt(var + eps)
    w_f = sc[:, None] * conv_w
    b_f = (sc * conv_b if conv_b is not None else 0.0) + beta_ - mean * sc
    return w_f, b_f


def prepare_params(params, H, batch_block):
    """One-time parameter folding + TPU-layout padding + batch tiling.
    Everything here (block-diagonal conv/BN weights, batch-tiled shifts, the
    attention block mask, the head selector) is built exactly once, outside
    the per-forward path."""
    bb = batch_block
    NL = H * LANE
    N = H * NUM_OUT
    lane_valid = (jnp.arange(NL) % LANE) < NUM_OUT             # valid spike lanes

    def shift_rows(b_fold):       # (C,) -> (CPAD, NL) masked per-channel shift
        tile = jnp.where(lane_valid[None, :], b_fold[:, None], 0.0)
        return jnp.zeros((CPAD, NL), F32).at[:EMBED_DIM, :].set(tile)

    def block_diag(w):            # (C, C) -> (bb*CPAD, bb*CPAD) block-diagonal
        blk = jnp.zeros((CPAD, CPAD), F32).at[:EMBED_DIM, :EMBED_DIM].set(w)
        return jnp.kron(jnp.eye(bb, dtype=F32), blk)

    prep = {
        "w1": jnp.zeros((NUM_INPUTS, LANE), F32).at[:, :NUM_HIDDEN].set(params["fc1_w"].T),
        "b1": jnp.zeros((1, LANE), F32).at[0, :NUM_HIDDEN].set(params["fc1_b"]),
        "w2": jnp.zeros((LANE, LANE), F32).at[:NUM_HIDDEN, :NUM_OUT].set(params["fc2_w"].T),
        "b2": jnp.zeros((1, LANE), F32).at[0, :NUM_OUT].set(params["fc2_b"]),
    }
    w_list, s_list = [], []
    for name in ("q", "k", "v"):
        w_f, b_f = _fold_conv_bn(params[f"{name}_w"], None,
                                 params[f"{name}_bn_gamma"], params[f"{name}_bn_beta"],
                                 params[f"{name}_bn_mean"], params[f"{name}_bn_var"])
        w_list.append(block_diag(w_f))
        s_list.append(jnp.tile(shift_rows(b_f), (bb, 1)))
    prep["wqkv"] = jnp.concatenate(w_list, axis=0)             # (3*bb*8, bb*8)
    prep["sqkv"] = jnp.concatenate(s_list, axis=0)             # (3*bb*8, NL)

    wp_f, bp_f = _fold_conv_bn(params["proj_w"], params["proj_b"],
                               params["proj_bn_gamma"], params["proj_bn_beta"],
                               params["proj_bn_mean"], params["proj_bn_var"])
    prep["wproj"] = block_diag(wp_f)                           # (bb*8, bb*8)
    prep["sproj"] = jnp.tile(shift_rows(bp_f), (bb, 1))        # (bb*8, NL)

    prep["mask"] = jnp.kron(jnp.eye(bb, dtype=F32),
                            jnp.ones((CPAD, CPAD), F32))       # attention block mask
    prep["sel"] = jnp.kron(jnp.eye(bb, dtype=F32),
                           jnp.ones((1, CPAD), F32))           # (bb, bb*8) head selector
    wl_rows = jnp.zeros((CPAD, HEAD_OUT), F32).at[:EMBED_DIM, :].set(
        params["lin_w"].T / N)                                 # 1/N (token mean) folded
    prep["wl"] = jnp.tile(wl_rows, (bb, 1))                    # (bb*8, 512)
    prep["bl"] = params["lin_b"].reshape(1, HEAD_OUT)
    return prep


def _pick_batch_block(batch, max_block=16):
    """Pick batch_block bb with batch % bb == 0 and (bb % 8 == 0 or bb == batch)
    (keeps the (bb, 512) output block and all sublane slices tile-aligned).
    bb <= 16 keeps the block-diagonal Q@K^T inside one 128-row MXU tile.
    bb=16 gives M=256 stage-1 rows (v6e/v7x MXU height); a result with >= 2
    grid steps is preferred so dual-TC chips (v7x) get work on both cores.
    v5e (single TC, 128-high MXU) is also well served by bb=8/16."""
    valid = [bb for bb in range(1, min(batch, max_block) + 1)
             if batch % bb == 0 and (bb % 8 == 0 or bb == batch)]
    if not valid:
        return batch                       # single grid step covering the batch
    best = max(valid)
    two_step = [bb for bb in valid if batch // bb >= 2]
    if two_step and 2 * max(two_step) >= best:
        return max(two_step)
    return best


# --------------------------------------------------------------------------
# Forward wrapper: one pallas_call, grid over batch blocks, parallel semantics.
# --------------------------------------------------------------------------
def snn_pulse_supplementation(x, prep, *, batch_block):
    B, C, H, Ni = x.shape
    assert C == EMBED_DIM and Ni == NUM_INPUTS
    bb = batch_block
    assert B % bb == 0 and (bb % 8 == 0 or bb == B)
    CHP = ((H * C + 7) // 8) * 8            # stage-1 rows per element, tile-aligned
    NL = H * LANE
    M8 = bb * CPAD
    grid_b = B // bb

    # (B,C,H,Ni) -> (B,H,C,Ni): stage-1 rows come out (h,c)-major so the
    # in-kernel relayout is contiguous; pad 12 -> 16 rows so the flatten to
    # (B*CHP, Ni) is tile-aligned (free inside the kernel pipeline).
    xt = jnp.transpose(x, (0, 2, 1, 3)).reshape(B, H * C, Ni)
    x2 = jnp.pad(xt, ((0, 0), (0, CHP - H * C), (0, 0))).reshape(B * CHP, Ni)

    kernel = functools.partial(fused_kernel, C=C, H=H, bb=bb, chp=CHP)
    out = pl.pallas_call(
        kernel,
        out_shape=jax.ShapeDtypeStruct((B, HEAD_OUT), F32),
        grid=(grid_b,),
        in_specs=[
            pl.BlockSpec((bb * CHP, Ni), lambda g: (g, 0)),
            pl.BlockSpec((NUM_INPUTS, LANE), lambda g: (0, 0)),
            pl.BlockSpec((1, LANE), lambda g: (0, 0)),
            pl.BlockSpec((LANE, LANE), lambda g: (0, 0)),
            pl.BlockSpec((1, LANE), lambda g: (0, 0)),
            pl.BlockSpec((3 * M8, M8), lambda g: (0, 0)),
            pl.BlockSpec((3 * M8, NL), lambda g: (0, 0)),
            pl.BlockSpec((M8, M8), lambda g: (0, 0)),
            pl.BlockSpec((M8, NL), lambda g: (0, 0)),
            pl.BlockSpec((M8, M8), lambda g: (0, 0)),
            pl.BlockSpec((bb, M8), lambda g: (0, 0)),
            pl.BlockSpec((M8, HEAD_OUT), lambda g: (0, 0)),
            pl.BlockSpec((1, HEAD_OUT), lambda g: (0, 0)),
        ],
        out_specs=pl.BlockSpec((bb, HEAD_OUT), lambda g: (g, 0)),
        scratch_shapes=[pltpu.VMEM((M8, NL), F32)],     # channel-major attention input
        compiler_params=pltpu.CompilerParams(
            dimension_semantics=("parallel",)),
    )(x2, prep["w1"], prep["b1"], prep["w2"], prep["b2"],
      prep["wqkv"], prep["sqkv"], prep["wproj"], prep["sproj"],
      prep["mask"], prep["sel"], prep["wl"], prep["bl"])
    return out                                          # final_x: [B, 512]


if __name__ == "__main__":
    B, H = 2, 4                            # input x: [B, C=3, H, 256]
    key = jax.random.PRNGKey(0)
    pkey, xkey = jax.random.split(key)
    params = init_params(pkey)
    bb = _pick_batch_block(B)
    prep = prepare_params(params, H, bb)   # hoisted: built exactly once
    x = jax.random.normal(xkey, (B, EMBED_DIM, H, NUM_INPUTS), F32)

    fwd = jax.jit(functools.partial(snn_pulse_supplementation, batch_block=bb))
    out = jax.block_until_ready(fwd(x, prep))
    assert out.shape == (B, HEAD_OUT) and out.dtype == F32
    print("KERNEL_OK")
</pallas_src>

<mosaic_0001>
module attributes {stable_mosaic.version = 11 : i64} {
  func.func @fused_kernel(%arg0: i32, %arg1: memref<32x256xf32, #tpu.memory_space<vmem>>, %arg2: memref<256x128xf32, #tpu.memory_space<vmem>>, %arg3: memref<1x128xf32, #tpu.memory_space<vmem>>, %arg4: memref<128x128xf32, #tpu.memory_space<vmem>>, %arg5: memref<1x128xf32, #tpu.memory_space<vmem>>, %arg6: memref<48x16xf32, #tpu.memory_space<vmem>>, %arg7: memref<48x512xf32, #tpu.memory_space<vmem>>, %arg8: memref<16x16xf32, #tpu.memory_space<vmem>>, %arg9: memref<16x512xf32, #tpu.memory_space<vmem>>, %arg10: memref<16x16xf32, #tpu.memory_space<vmem>>, %arg11: memref<2x16xf32, #tpu.memory_space<vmem>>, %arg12: memref<16x512xf32, #tpu.memory_space<vmem>>, %arg13: memref<1x512xf32, #tpu.memory_space<vmem>>, %arg14: memref<2x512xf32, #tpu.memory_space<vmem>>, %arg15: memref<16x512xf32, #tpu.memory_space<vmem>>) attributes {dimension_semantics = [#tpu.dimension_semantics<parallel>], iteration_bounds = array<i64: 1>, scalar_prefetch = 0 : i64, scratch_operands = 1 : i64, tpu.core_type = #tpu.core_type<tc>, window_params = [{transform_indices = @transform_0, window_bounds = array<i64: 32, 256>}, {pipeline_mode = #tpu.pipeline_mode<synchronous>, transform_indices = @transform_1, window_bounds = array<i64: 256, 128>}, {pipeline_mode = #tpu.pipeline_mode<synchronous>, transform_indices = @transform_2, window_bounds = array<i64: 1, 128>}, {pipeline_mode = #tpu.pipeline_mode<synchronous>, transform_indices = @transform_3, window_bounds = array<i64: 128, 128>}, {pipeline_mode = #tpu.pipeline_mode<synchronous>, transform_indices = @transform_4, window_bounds = array<i64: 1, 128>}, {pipeline_mode = #tpu.pipeline_mode<synchronous>, transform_indices = @transform_5, window_bounds = array<i64: 48, 16>}, {pipeline_mode = #tpu.pipeline_mode<synchronous>, transform_indices = @transform_6, window_bounds = array<i64: 48, 512>}, {pipeline_mode = #tpu.pipeline_mode<synchronous>, transform_indices = @transform_7, window_bounds = array<i64: 16, 16>}, {pipeline_mode = #tpu.pipeline_mode<synchronous>, transform_indices = @transform_8, window_bounds = array<i64: 16, 512>}, {pipeline_mode = #tpu.pipeline_mode<synchronous>, transform_indices = @transform_9, window_bounds = array<i64: 16, 16>}, {pipeline_mode = #tpu.pipeline_mode<synchronous>, transform_indices = @transform_10, window_bounds = array<i64: 2, 16>}, {pipeline_mode = #tpu.pipeline_mode<synchronous>, transform_indices = @transform_11, window_bounds = array<i64: 16, 512>}, {pipeline_mode = #tpu.pipeline_mode<synchronous>, transform_indices = @transform_12, window_bounds = array<i64: 1, 512>}, {transform_indices = @transform_13, window_bounds = array<i64: 2, 512>}]} {
    %c0 = arith.constant 0 : index
    %c0_0 = arith.constant 0 : index
    %0 = vector.load %arg1[%c0, %c0_0] : memref<32x256xf32, #tpu.memory_space<vmem>>, vector<32x256xf32>
    %c0_1 = arith.constant 0 : index
    %c0_2 = arith.constant 0 : index
    %1 = vector.load %arg2[%c0_1, %c0_2] : memref<256x128xf32, #tpu.memory_space<vmem>>, vector<256x128xf32>
    %cst = arith.constant dense<0.000000e+00> : vector<32x128xf32>
    %2 = tpu.matmul %0, %1, %cst {dimension_numbers = #tpu.dot_dimension_numbers<[1], [0], [0], [1], [0, 0, 1, 1], [], []>} : vector<32x256xf32>, vector<256x128xf32>, vector<32x128xf32> -> vector<32x128xf32>
    %c0_3 = arith.constant 0 : index
    %c0_4 = arith.constant 0 : index
    %3 = vector.load %arg3[%c0_3, %c0_4] : memref<1x128xf32, #tpu.memory_space<vmem>>, vector<1x128xf32>
    %4 = vector.broadcast %3 : vector<1x128xf32> to vector<32x128xf32>
    %5 = arith.addf %2, %4 : vector<32x128xf32>
    %cst_5 = arith.constant 1.000000e+00 : f32
    %6 = vector.broadcast %cst_5 : f32 to vector<32x128xf32>
    %7 = arith.cmpf ogt, %5, %6 : vector<32x128xf32>
    %cst_6 = arith.constant 1.000000e+00 : f32
    %cst_7 = arith.constant 0.000000e+00 : f32
    %8 = vector.broadcast %cst_6 : f32 to vector<32x128xf32>
    %9 = vector.broadcast %cst_7 : f32 to vector<32x128xf32>
    %10 = arith.select %7, %8, %9 : vector<32x128xi1>, vector<32x128xf32>
    %c0_8 = arith.constant 0 : index
    %c0_9 = arith.constant 0 : index
    %11 = vector.load %arg4[%c0_8, %c0_9] : memref<128x128xf32, #tpu.memory_space<vmem>>, vector<128x128xf32>
    %cst_10 = arith.constant dense<0.000000e+00> : vector<32x128xf32>
    %12 = tpu.matmul %10, %11, %cst_10 {dimension_numbers = #tpu.dot_dimension_numbers<[1], [0], [0], [1], [0, 0, 1, 1], [], []>} : vector<32x128xf32>, vector<128x128xf32>, vector<32x128xf32> -> vector<32x128xf32>
    %c0_11 = arith.constant 0 : index
    %c0_12 = arith.constant 0 : index
    %13 = vector.load %arg5[%c0_11, %c0_12] : memref<1x128xf32, #tpu.memory_space<vmem>>, vector<1x128xf32>
    %14 = vector.broadcast %13 : vector<1x128xf32> to vector<32x128xf32>
    %15 = arith.addf %12, %14 : vector<32x128xf32>
    %cst_13 = arith.constant 1.000000e+00 : f32
    %16 = vector.broadcast %cst_13 : f32 to vector<32x128xf32>
    %17 = arith.cmpf ogt, %15, %16 : vector<32x128xf32>
    %cst_14 = arith.constant 1.000000e+00 : f32
    %cst_15 = arith.constant 0.000000e+00 : f32
    %18 = vector.broadcast %cst_14 : f32 to vector<32x128xf32>
    %19 = vector.broadcast %cst_15 : f32 to vector<32x128xf32>
    %20 = arith.select %17, %18, %19 : vector<32x128xi1>, vector<32x128xf32>
    %cst_16 = arith.constant 0.000000e+00 : f32
    %21 = vector.broadcast %cst_16 : f32 to vector<5x512xf32>
    %c3 = arith.constant 3 : index
    %c0_17 = arith.constant 0 : index
    %22 = vector.load %arg15[%c3, %c0_17] : memref<16x512xf32, #tpu.memory_space<vmem>>, vector<5x512xf32>
    tpu.vector_store %arg15[%c3, %c0_17], %21 {strides = array<i32>} : memref<16x512xf32, #tpu.memory_space<vmem>>, vector<5x512xf32>,
    %c11 = arith.constant 11 : index
    %c0_18 = arith.constant 0 : index
    %23 = vector.load %arg15[%c11, %c0_18] : memref<16x512xf32, #tpu.memory_space<vmem>>, vector<5x512xf32>
    tpu.vector_store %arg15[%c11, %c0_18], %21 {strides = array<i32>} : memref<16x512xf32, #tpu.memory_space<vmem>>, vector<5x512xf32>,
    %24 = vector.extract_strided_slice %20 {offsets = [0, 0], sizes = [3, 128], strides = [1, 1]} : vector<32x128xf32> to vector<3x128xf32>
    %c0_19 = arith.constant 0 : index
    %c0_20 = arith.constant 0 : index
    %25 = vector.load %arg15[%c0_19, %c0_20] : memref<16x512xf32, #tpu.memory_space<vmem>>, vector<3x128xf32>
    tpu.vector_store %arg15[%c0_19, %c0_20], %24 {strides = array<i32>} : memref<16x512xf32, #tpu.memory_space<vmem>>, vector<3x128xf32>,
    %26 = vector.extract_strided_slice %20 {offsets = [3, 0], sizes = [3, 128], strides = [1, 1]} : vector<32x128xf32> to vector<3x128xf32>
    %c0_21 = arith.constant 0 : index
    %c128 = arith.constant 128 : index
    %27 = vector.load %arg15[%c0_21, %c128] : memref<16x512xf32, #tpu.memory_space<vmem>>, vector<3x128xf32>
    tpu.vector_store %arg15[%c0_21, %c128], %26 {strides = array<i32>} : memref<16x512xf32, #tpu.memory_space<vmem>>, vector<3x128xf32>,
    %28 = vector.extract_strided_slice %20 {offsets = [6, 0], sizes = [3, 128], strides = [1, 1]} : vector<32x128xf32> to vector<3x128xf32>
    %c0_22 = arith.constant 0 : index
    %c256 = arith.constant 256 : index
    %29 = vector.load %arg15[%c0_22, %c256] : memref<16x512xf32, #tpu.memory_space<vmem>>, vector<3x128xf32>
    tpu.vector_store %arg15[%c0_22, %c256], %28 {strides = array<i32>} : memref<16x512xf32, #tpu.memory_space<vmem>>, vector<3x128xf32>,
    %30 = vector.extract_strided_slice %20 {offsets = [9, 0], sizes = [3, 128], strides = [1, 1]} : vector<32x128xf32> to vector<3x128xf32>
    %c0_23 = arith.constant 0 : index
    %c384 = arith.constant 384 : index
    %31 = vector.load %arg15[%c0_23, %c384] : memref<16x512xf32, #tpu.memory_space<vmem>>, vector<3x128xf32>
    tpu.vector_store %arg15[%c0_23, %c384], %30 {strides = array<i32>} : memref<16x512xf32, #tpu.memory_space<vmem>>, vector<3x128xf32>,
    %32 = vector.extract_strided_slice %20 {offsets = [16, 0], sizes = [3, 128], strides = [1, 1]} : vector<32x128xf32> to vector<3x128xf32>
    %c8 = arith.constant 8 : index
    %c0_24 = arith.constant 0 : index
    %33 = vector.load %arg15[%c8, %c0_24] : memref<16x512xf32, #tpu.memory_space<vmem>>, vector<3x128xf32>
    tpu.vector_store %arg15[%c8, %c0_24], %32 {strides = array<i32>} : memref<16x512xf32, #tpu.memory_space<vmem>>, vector<3x128xf32>,
    %34 = vector.extract_strided_slice %20 {offsets = [19, 0], sizes = [3, 128], strides = [1, 1]} : vector<32x128xf32> to vector<3x128xf32>
    %c8_25 = arith.constant 8 : index
    %c128_26 = arith.constant 128 : index
    %35 = vector.load %arg15[%c8_25, %c128_26] : memref<16x512xf32, #tpu.memory_space<vmem>>, vector<3x128xf32>
    tpu.vector_store %arg15[%c8_25, %c128_26], %34 {strides = array<i32>} : memref<16x512xf32, #tpu.memory_space<vmem>>, vector<3x128xf32>,
    %36 = vector.extract_strided_slice %20 {offsets = [22, 0], sizes = [3, 128], strides = [1, 1]} : vector<32x128xf32> to vector<3x128xf32>
    %c8_27 = arith.constant 8 : index
    %c256_28 = arith.constant 256 : index
    %37 = vector.load %arg15[%c8_27, %c256_28] : memref<16x512xf32, #tpu.memory_space<vmem>>, vector<3x128xf32>
    tpu.vector_store %arg15[%c8_27, %c256_28], %36 {strides = array<i32>} : memref<16x512xf32, #tpu.memory_space<vmem>>, vector<3x128xf32>,
    %38 = vector.extract_strided_slice %20 {offsets = [25, 0], sizes = [3, 128], strides = [1, 1]} : vector<32x128xf32> to vector<3x128xf32>
    %c8_29 = arith.constant 8 : index
    %c384_30 = arith.constant 384 : index
    %39 = vector.load %arg15[%c8_29, %c384_30] : memref<16x512xf32, #tpu.memory_space<vmem>>, vector<3x128xf32>
    tpu.vector_store %arg15[%c8_29, %c384_30], %38 {strides = array<i32>} : memref<16x512xf32, #tpu.memory_space<vmem>>, vector<3x128xf32>,
    %c0_31 = arith.constant 0 : index
    %c0_32 = arith.constant 0 : index
    %40 = vector.load %arg15[%c0_31, %c0_32] : memref<16x512xf32, #tpu.memory_space<vmem>>, vector<16x512xf32>
    %c0_33 = arith.constant 0 : index
    %c0_34 = arith.constant 0 : index
    %41 = vector.load %arg6[%c0_33, %c0_34] : memref<48x16xf32, #tpu.memory_space<vmem>>, vector<48x16xf32>
    %cst_35 = arith.constant dense<0.000000e+00> : vector<48x512xf32>
    %42 = tpu.matmul %41, %40, %cst_35 {dimension_numbers = #tpu.dot_dimension_numbers<[1], [0], [0], [1], [0, 0, 1, 1], [], []>} : vector<48x16xf32>, vector<16x512xf32>, vector<48x512xf32> -> vector<48x512xf32>
    %c0_36 = arith.constant 0 : index
    %c0_37 = arith.constant 0 : index
    %43 = vector.load %arg7[%c0_36, %c0_37] : memref<48x512xf32, #tpu.memory_space<vmem>>, vector<48x512xf32>
    %44 = arith.addf %42, %43 : vector<48x512xf32>
    %cst_38 = arith.constant 2.000000e+00 : f32
    %45 = vector.broadcast %cst_38 : f32 to vector<48x512xf32>
    %46 = arith.cmpf oge, %44, %45 : vector<48x512xf32>
    %cst_39 = arith.constant 1.000000e+00 : f32
    %cst_40 = arith.constant 0.000000e+00 : f32
    %47 = vector.broadcast %cst_39 : f32 to vector<48x512xf32>
    %48 = vector.broadcast %cst_40 : f32 to vector<48x512xf32>
    %49 = arith.select %46, %47, %48 : vector<48x512xi1>, vector<48x512xf32>
    %50 = vector.extract_strided_slice %49 {offsets = [0, 0], sizes = [16, 512], strides = [1, 1]} : vector<48x512xf32> to vector<16x512xf32>
    %51 = vector.extract_strided_slice %49 {offsets = [16, 0], sizes = [16, 512], strides = [1, 1]} : vector<48x512xf32> to vector<16x512xf32>
    %52 = vector.extract_strided_slice %49 {offsets = [32, 0], sizes = [16, 512], strides = [1, 1]} : vector<48x512xf32> to vector<16x512xf32>
    %cst_41 = arith.constant dense<0.000000e+00> : vector<16x16xf32>
    %53 = tpu.matmul %50, %51, %cst_41 {dimension_numbers = #tpu.dot_dimension_numbers<[1], [1], [0], [0], [0, 0, 1, 0], [], []>} : vector<16x512xf32>, vector<16x512xf32>, vector<16x16xf32> -> vector<16x16xf32>
    %c0_42 = arith.constant 0 : index
    %c0_43 = arith.constant 0 : index
    %54 = vector.load %arg10[%c0_42, %c0_43] : memref<16x16xf32, #tpu.memory_space<vmem>>, vector<16x16xf32>
    %55 = arith.mulf %53, %54 : vector<16x16xf32>
    %cst_44 = arith.constant dense<0.000000e+00> : vector<16x512xf32>
    %56 = tpu.matmul %55, %52, %cst_44 {dimension_numbers = #tpu.dot_dimension_numbers<[1], [0], [0], [1], [0, 0, 1, 1], [], []>} : vector<16x16xf32>, vector<16x512xf32>, vector<16x512xf32> -> vector<16x512xf32>
    %cst_45 = arith.constant 1.250000e-01 : f32
    %57 = vector.broadcast %cst_45 : f32 to vector<16x512xf32>
    %58 = arith.mulf %56, %57 : vector<16x512xf32>
    %cst_46 = arith.constant 1.000000e+00 : f32
    %59 = vector.broadcast %cst_46 : f32 to vector<16x512xf32>
    %60 = arith.cmpf oge, %58, %59 : vector<16x512xf32>
    %cst_47 = arith.constant 1.000000e+00 : f32
    %cst_48 = arith.constant 0.000000e+00 : f32
    %61 = vector.broadcast %cst_47 : f32 to vector<16x512xf32>
    %62 = vector.broadcast %cst_48 : f32 to vector<16x512xf32>
    %63 = arith.select %60, %61, %62 : vector<16x512xi1>, vector<16x512xf32>
    %c0_49 = arith.constant 0 : index
    %c0_50 = arith.constant 0 : index
    %64 = vector.load %arg8[%c0_49, %c0_50] : memref<16x16xf32, #tpu.memory_space<vmem>>, vector<16x16xf32>
    %cst_51 = arith.constant dense<0.000000e+00> : vector<16x512xf32>
    %65 = tpu.matmul %64, %63, %cst_51 {dimension_numbers = #tpu.dot_dimension_numbers<[1], [0], [0], [1], [0, 0, 1, 1], [], []>} : vector<16x16xf32>, vector<16x512xf32>, vector<16x512xf32> -> vector<16x512xf32>
    %c0_52 = arith.constant 0 : index
    %c0_53 = arith.constant 0 : index
    %66 = vector.load %arg9[%c0_52, %c0_53] : memref<16x512xf32, #tpu.memory_space<vmem>>, vector<16x512xf32>
    %67 = arith.addf %65, %66 : vector<16x512xf32>
    %cst_54 = arith.constant 5.000000e-01 : f32
    %68 = vector.broadcast %cst_54 : f32 to vector<16x512xf32>
    %69 = arith.mulf %68, %67 : vector<16x512xf32>
    %cst_55 = arith.constant 1.000000e+00 : f32
    %70 = vector.broadcast %cst_55 : f32 to vector<16x512xf32>
    %71 = arith.cmpf oge, %69, %70 : vector<16x512xf32>
    %cst_56 = arith.constant 1.000000e+00 : f32
    %cst_57 = arith.constant 0.000000e+00 : f32
    %72 = vector.broadcast %cst_56 : f32 to vector<16x512xf32>
    %73 = vector.broadcast %cst_57 : f32 to vector<16x512xf32>
    %74 = arith.select %71, %72, %73 : vector<16x512xi1>, vector<16x512xf32>
    %cst_58 = arith.constant 1.000000e+00 : f32
    %75 = vector.broadcast %cst_58 : f32 to vector<16x512xf32>
    %76 = arith.subf %75, %74 : vector<16x512xf32>
    %77 = arith.mulf %76, %69 : vector<16x512xf32>
    %78 = arith.addf %77, %74 : vector<16x512xf32>
    %cst_59 = arith.constant 5.000000e-01 : f32
    %79 = vector.broadcast %cst_59 : f32 to vector<16x512xf32>
    %80 = arith.mulf %79, %78 : vector<16x512xf32>
    %cst_60 = arith.constant 1.000000e+00 : f32
    %81 = vector.broadcast %cst_60 : f32 to vector<16x512xf32>
    %82 = arith.cmpf oge, %80, %81 : vector<16x512xf32>
    %cst_61 = arith.constant 1.000000e+00 : f32
    %cst_62 = arith.constant 0.000000e+00 : f32
    %83 = vector.broadcast %cst_61 : f32 to vector<16x512xf32>
    %84 = vector.broadcast %cst_62 : f32 to vector<16x512xf32>
    %85 = arith.select %82, %83, %84 : vector<16x512xi1>, vector<16x512xf32>
    %86 = arith.addf %40, %85 : vector<16x512xf32>
    %cst_63 = arith.constant dense<0.000000e+00> : vector<16xf32>
    %87 = vector.multi_reduction <add>, %86, %cst_63 [1] : vector<16x512xf32> to vector<16xf32>
    %88 = vector.shape_cast %87 : vector<16xf32> to vector<16x1xf32>
    %c0_64 = arith.constant 0 : index
    %c0_65 = arith.constant 0 : index
    %89 = vector.load %arg12[%c0_64, %c0_65] : memref<16x512xf32, #tpu.memory_space<vmem>>, vector<16x512xf32>
    %90 = vector.broadcast %88 : vector<16x1xf32> to vector<16x512xf32>
    %91 = arith.mulf %90, %89 : vector<16x512xf32>
    %c0_66 = arith.constant 0 : index
    %c0_67 = arith.constant 0 : index
    %92 = vector.load %arg11[%c0_66, %c0_67] : memref<2x16xf32, #tpu.memory_space<vmem>>, vector<2x16xf32>
    %cst_68 = arith.constant dense<0.000000e+00> : vector<2x512xf32>
    %93 = tpu.matmul %92, %91, %cst_68 {dimension_numbers = #tpu.dot_dimension_numbers<[1], [0], [0], [1], [0, 0, 1, 1], [], []>} : vector<2x16xf32>, vector<16x512xf32>, vector<2x512xf32> -> vector<2x512xf32>
    %c0_69 = arith.constant 0 : index
    %c0_70 = arith.constant 0 : index
    %94 = vector.load %arg13[%c0_69, %c0_70] : memref<1x512xf32, #tpu.memory_space<vmem>>, vector<1x512xf32>
    %95 = vector.broadcast %94 : vector<1x512xf32> to vector<2x512xf32>
    %96 = arith.addf %93, %95 : vector<2x512xf32>
    %c0_71 = arith.constant 0 : index
    %c0_72 = arith.constant 0 : index
    %97 = vector.load %arg14[%c0_71, %c0_72] : memref<2x512xf32, #tpu.memory_space<vmem>>, vector<2x512xf32>
    tpu.vector_store %arg14[%c0_71, %c0_72], %96 {strides = array<i32>} : memref<2x512xf32, #tpu.memory_space<vmem>>, vector<2x512xf32>,
    return
  }
  func.func @transform_0(%arg0: i32) -> (i32, i32) {
    %c0_i32 = arith.constant 0 : i32
    %c0_i32_0 = arith.constant 0 : i32
    return %arg0, %c0_i32 : i32, i32
  }
  func.func @transform_1(%arg0: i32) -> (i32, i32) {
    %c0_i32 = arith.constant 0 : i32
    %c0_i32_0 = arith.constant 0 : i32
    %c0_i32_1 = arith.constant 0 : i32
    return %c0_i32, %c0_i32_0 : i32, i32
  }
  func.func @transform_2(%arg0: i32) -> (i32, i32) {
    %c0_i32 = arith.constant 0 : i32
    %c0_i32_0 = arith.constant 0 : i32
    %c0_i32_1 = arith.constant 0 : i32
    return %c0_i32, %c0_i32_0 : i32, i32
  }
  func.func @transform_3(%arg0: i32) -> (i32, i32) {
    %c0_i32 = arith.constant 0 : i32
    %c0_i32_0 = arith.constant 0 : i32
    %c0_i32_1 = arith.constant 0 : i32
    return %c0_i32, %c0_i32_0 : i32, i32
  }
  func.func @transform_4(%arg0: i32) -> (i32, i32) {
    %c0_i32 = arith.constant 0 : i32
    %c0_i32_0 = arith.constant 0 : i32
    %c0_i32_1 = arith.constant 0 : i32
    return %c0_i32, %c0_i32_0 : i32, i32
  }
  func.func @transform_5(%arg0: i32) -> (i32, i32) {
    %c0_i32 = arith.constant 0 : i32
    %c0_i32_0 = arith.constant 0 : i32
    %c0_i32_1 = arith.constant 0 : i32
    return %c0_i32, %c0_i32_0 : i32, i32
  }
  func.func @transform_6(%arg0: i32) -> (i32, i32) {
    %c0_i32 = arith.constant 0 : i32
    %c0_i32_0 = arith.constant 0 : i32
    %c0_i32_1 = arith.constant 0 : i32
    return %c0_i32, %c0_i32_0 : i32, i32
  }
  func.func @transform_7(%arg0: i32) -> (i32, i32) {
    %c0_i32 = arith.constant 0 : i32
    %c0_i32_0 = arith.constant 0 : i32
    %c0_i32_1 = arith.constant 0 : i32
    return %c0_i32, %c0_i32_0 : i32, i32
  }
  func.func @transform_8(%arg0: i32) -> (i32, i32) {
    %c0_i32 = arith.constant 0 : i32
    %c0_i32_0 = arith.constant 0 : i32
    %c0_i32_1 = arith.constant 0 : i32
    return %c0_i32, %c0_i32_0 : i32, i32
  }
  func.func @transform_9(%arg0: i32) -> (i32, i32) {
    %c0_i32 = arith.constant 0 : i32
    %c0_i32_0 = arith.constant 0 : i32
    %c0_i32_1 = arith.constant 0 : i32
    return %c0_i32, %c0_i32_0 : i32, i32
  }
  func.func @transform_10(%arg0: i32) -> (i32, i32) {
    %c0_i32 = arith.constant 0 : i32
    %c0_i32_0 = arith.constant 0 : i32
    %c0_i32_1 = arith.constant 0 : i32
    return %c0_i32, %c0_i32_0 : i32, i32
  }
  func.func @transform_11(%arg0: i32) -> (i32, i32) {
    %c0_i32 = arith.constant 0 : i32
    %c0_i32_0 = arith.constant 0 : i32
    %c0_i32_1 = arith.constant 0 : i32
    return %c0_i32, %c0_i32_0 : i32, i32
  }
  func.func @transform_12(%arg0: i32) -> (i32, i32) {
    %c0_i32 = arith.constant 0 : i32
    %c0_i32_0 = arith.constant 0 : i32
    %c0_i32_1 = arith.constant 0 : i32
    return %c0_i32, %c0_i32_0 : i32, i32
  }
  func.func @transform_13(%arg0: i32) -> (i32, i32) {
    %c0_i32 = arith.constant 0 : i32
    %c0_i32_0 = arith.constant 0 : i32
    return %arg0, %c0_i32 : i32, i32
  }
}

</mosaic_0001>

<bundles_post_ra>
// kernel: snn_pulse_supplementation.1
= control target key start
LH: loop header
LB: loop body
LE: loop exit
PB: predicated region body
PF: predicated region fallthrough
CT: control target
= control target key end

     0   :  { %18 = vsyncpa [#allocation4], 0  ;;  %s2377_s0 = inlined_call_operand.vmem [shape: f32[32,256], index: 0, kind: input, shape index: {}]   ;;  %s2378_s1 = inlined_call_operand.vmem [shape: f32[256,128], index: 1, kind: input, shape index: {}]   ;;  %s2379_s2 = inlined_call_operand.vmem [shape: f32[1,128], index: 2, kind: input, shape index: {}]   ;;  %s2380_s3 = inlined_call_operand.vmem [shape: f32[128,128], index: 3, kind: input, shape index: {}]   ;;  %s2381_s4 = inlined_call_operand.vmem [shape: f32[1,128], index: 4, kind: input, shape index: {}]   ;;  %s2382_s5 = inlined_call_operand.vmem [shape: f32[48,16], index: 5, kind: input, shape index: {}]   ;;  %s2383_s6 = inlined_call_operand.hbm [shape: f32[48,512], index: 6, kind: input, shape index: {}]   ;;  %s2384_s7 = inlined_call_operand.vmem [shape: f32[16,16], index: 7, kind: input, shape index: {}]   ;;  %s2385_s8 = inlined_call_operand.hbm [shape: f32[16,512], index: 8, kind: input, shape index: {}]   ;;  %s2386_s9 = inlined_call_operand.vmem [shape: f32[16,16], index: 9, kind: input, shape index: {}]   ;;  %s2387_s10 = inlined_call_operand.vmem [shape: f32[2,16], index: 10, kind: input, shape index: {}]   ;;  %s2388_s11 = inlined_call_operand.hbm [shape: f32[16,512], index: 11, kind: input, shape index: {}]   ;;  %s2389_s12 = inlined_call_operand.vmem [shape: f32[1,512], index: 12, kind: input, shape index: {}]   ;;  %s2390_s13 = inlined_call_operand.hbm [shape: f32[2,512], index: 13, kind: output, shape index: {}]  }
   0x1   :  { %19 = vsyncpa [#allocation7], 0 }
   0x2   :  { %20 = vsyncpa [#allocation5], 0  ;;  %s1881_s25 = smov [#allocation6]   ;;  %s1882_s27 = smov [#allocation3]  }
   0x3   :  { %s52_s26 = sshll.u32 %s1881_s25, 4  ;;  %s38_s28 = sshll.u32 %s1882_s27, 4  ;;  %s53_s26 = int_to_ptr.vmem [resolvable:$true] %s52_s26  ;;  %s1961_s28 = int_to_ptr.vmem [resolvable:$true] %s38_s28 }
   0x4   :  { %s1787_s14 = scalar_lea.hbm %s2385_s8, 1024 }
   0x5   :  { %p1788_p0 = scmp.ne.s32.totalorder %s2385_s8, %s1787_s14  ;;  %p1791_p1 = scmp.lt.u32.totalorder %s1787_s14, %s2385_s8 }
   0x7   :  { %p1793_p2 = pnand %p1791_p1, %p1788_p0 }
   0x9   :  { %1796 = shalt.err (!%p1793_p2)
}
   0xa   :  { %s1797_s19 = scalar_lea.vmem %s53_s26, 1024  ;;  %p1802_p4 = scmp.lt.s32.totalorder %s53_s26, %s53_s26 }
   0xb   :  { %p1798_p3 = scmp.ne.s32.totalorder %s53_s26, %s1797_s19  ;;  %p1803_p5 = scmp.lt.s32.totalorder %s1797_s19, %s1797_s19 }
   0xd   :  { %p1804_p6 = por %p1803_p5, %p1802_p4 }
   0xf   :  { %p1805_p7 = pnand %p1804_p6, %p1798_p3 }
  0x11   :  { %1808 = shalt.err (!%p1805_p7)
}
  0x12   :  { %s1883_s20 = smov 512   ;;  %s1884_s21 = smov 32  }
  0x13   :  { %58 = dma.hbm_to_vmem [thread:$0]  %s2385_s8, 1024, %s53_s26, [#allocation7], %s1883_s20, %s1883_s20, %s1884_s21  }
  0x14   :  { %s1809_s27 = scalar_lea.hbm %s2383_s6, 3072 }
  0x15   :  { %p1810_p8 = scmp.ne.s32.totalorder %s2383_s6, %s1809_s27  ;;  %p1813_p9 = scmp.lt.u32.totalorder %s1809_s27, %s2383_s6 }
  0x17   :  { %p1815_p10 = pnand %p1813_p9, %p1810_p8 }
  0x19   :  { %1818 = shalt.err (!%p1815_p10)
}
  0x1a   :  { %s1819_s16 = scalar_lea.vmem %s1961_s28, 3072  ;;  %p1824_p12 = scmp.lt.s32.totalorder %s1961_s28, %s1961_s28 }
  0x1b   :  { %p1820_p11 = scmp.ne.s32.totalorder %s1961_s28, %s1819_s16  ;;  %p1825_p13 = scmp.lt.s32.totalorder %s1819_s16, %s1819_s16 }
  0x1d   :  { %p1826_p0 = por %p1825_p13, %p1824_p12 }
  0x1f   :  { %p1827_p1 = pnand %p1826_p0, %p1820_p11 }
  0x21   :  { %1830 = shalt.err (!%p1827_p1)
}
  0x22   :  { %44 = dma.hbm_to_vmem [thread:$0]  %s2383_s6, 3072, %s1961_s28, [#allocation4], %s1883_s20, %s1883_s20, %s1884_s21  }
  0x23   :  { %s1885_s17 = smov [#allocation8]   ;;  %s1831_s23 = scalar_lea.hbm %s2388_s11, 1024 }
  0x24   :  { %s68_s18 = sshll.u32 %s1885_s17, 4  ;;  %p1832_p2 = scmp.ne.s32.totalorder %s2388_s11, %s1831_s23  ;;  %s69_s18 = int_to_ptr.vmem [resolvable:$true] %s68_s18 }
  0x25   :  { %p1835_p3 = scmp.lt.u32.totalorder %s1831_s23, %s2388_s11 }
  0x27   :  { %p1837_p4 = pnand %p1835_p3, %p1832_p2 }
  0x29   :  { %1840 = shalt.err (!%p1837_p4)
}
  0x2a   :  { %s1841_s30 = scalar_lea.vmem %s69_s18, 1024  ;;  %p1846_p6 = scmp.lt.s32.totalorder %s69_s18, %s69_s18 }
  0x2b   :  { %p1842_p5 = scmp.ne.s32.totalorder %s69_s18, %s1841_s30  ;;  %p1847_p7 = scmp.lt.s32.totalorder %s1841_s30, %s1841_s30 }
  0x2d   :  { %p1848_p8 = por %p1847_p7, %p1846_p6 }
  0x2f   :  { %p1849_p9 = pnand %p1848_p8, %p1842_p5 }
  0x31   :  { %1852 = shalt.err (!%p1849_p9)
}
  0x32   :  { %74 = dma.hbm_to_vmem [thread:$0]  %s2388_s11, 1024, %s69_s18, [#allocation7], %s1883_s20, %s1883_s20, %s1884_s21  }
  0x33   :  { %1875 = dma.done.wait [#allocation4], 3072  }
  0x34   :  { %1876 = vsyncadd [#allocation4], 4294964224 }
  0x35   :  { %1877 = dma.done.wait [#allocation7], 2048  }
  0x36   :  { %1878 = vsyncadd [#allocation7], 4294965248  ;;  %v110_v0 = vld [vmem:[%s2378_s1 + $0x80] sm:$0xff]  ;;  %v111_v1 = vld [vmem:[%s2378_s1 + $0x88] sm:$0xff]  ;;  %vm356_vm6 = vcmask 1041408   ;;  %vm417_vm9 = vcmask 130048  }
  0x37   :  { %v94_v2 = vld [vmem:[%s2378_s1] sm:$0xff]  ;;  %v1669_v3 = vpack.c.bf16 %v111_v1, %v110_v0  ;;  %v95_v4 = vld [vmem:[%s2378_s1 + $0x8] sm:$0xff]  ;;  %v112_v5 = vld [vmem:[%s2378_s1 + $0x90] sm:$0xff] }
  0x38   :  { %v113_v6 = vld [vmem:[%s2378_s1 + $0x98] sm:$0xff]  ;;  %v1671_v7 = vpack.c.bf16 %v95_v4, %v94_v2  ;;  %v96_v9 = vld [vmem:[%s2378_s1 + $0x10] sm:$0xff]  ;;  %v114_v11 = vld [vmem:[%s2378_s1 + $0xa0] sm:$0xff] }
  0x39   :  { %v1673_v8 = vpack.c.bf16 %v113_v6, %v112_v5  ;;  %v97_v10 = vld [vmem:[%s2378_s1 + $0x18] sm:$0xff]  ;;  %1670 = vmatprep.subr.bf16.mxu0 %v1669_v3  ;;  %v115_v12 = vld [vmem:[%s2378_s1 + $0xa8] sm:$0xff]  ;;  %v98_v15 = vld [vmem:[%s2378_s1 + $0x20] sm:$0xff] }
  0x3a   :  { %1672 = vmatpush3.bf16.msra.mxu0 %v1671_v7  ;;  %v1675_v13 = vpack.c.bf16 %v97_v10, %v96_v9  ;;  %v1677_v14 = vpack.c.bf16 %v115_v12, %v114_v11  ;;  %v99_v16 = vld [vmem:[%s2378_s1 + $0x28] sm:$0xff]  ;;  %v116_v17 = vld [vmem:[%s2378_s1 + $0xb0] sm:$0xff]  ;;  %v117_v18 = vld [vmem:[%s2378_s1 + $0xb8] sm:$0xff] }
  0x3b   :  { %1674 = vmatprep.subr.bf16.mxu0 %v1673_v8  ;;  %v1679_v19 = vpack.c.bf16 %v99_v16, %v98_v15  ;;  %v1681_v20 = vpack.c.bf16 %v117_v18, %v116_v17  ;;  %v100_v21 = vld [vmem:[%s2378_s1 + $0x30] sm:$0xff]  ;;  %v101_v22 = vld [vmem:[%s2378_s1 + $0x38] sm:$0xff]  ;;  %v118_v23 = vld [vmem:[%s2378_s1 + $0xc0] sm:$0xff] }
  0x3c   :  { %v119_v24 = vld [vmem:[%s2378_s1 + $0xc8] sm:$0xff]  ;;  %v1683_v26 = vpack.c.bf16 %v101_v22, %v100_v21  ;;  %v102_v27 = vld [vmem:[%s2378_s1 + $0x40] sm:$0xff]  ;;  %v120_v30 = vld [vmem:[%s2378_s1 + $0xd0] sm:$0xff] }
  0x3d   :  { %v87_v25 = vld [vmem:[%s2377_s0 + $0x8] sm:$0xff]  ;;  %v1685_v29 = vpack.c.bf16 %v119_v24, %v118_v23  ;;  %v226_v31 = vld [vmem:[%s2380_s3] sm:$0xff]  ;;  %v121_v33 = vld [vmem:[%s2378_s1 + $0xd8] sm:$0xff]  ;;  %v1886_v24 = vmov 1.0  }
  0x3e   :  { %1676 = vmatpush3.bf16.msra.mxu0 %v1675_v13  ;;  %197 = vmatprep.mubr.f32.mxu0 %v87_v25  ;;  %v103_v28 = vld [vmem:[%s2378_s1 + $0x48] sm:$0xff]  ;;  %v228_v35 = vld [vmem:[%s2380_s3 + $0x10] sm:$0xff]  ;;  %v229_v36 = vld [vmem:[%s2380_s3 + $0x18] sm:$0xff]  ;;  %v1689_v41 = vpack.c.bf16 %v121_v33, %v120_v30 }
  0x3f   :  { %1678 = vmatprep.subr.bf16.mxu0 %v1677_v14  ;;  %v227_v32 = vld [vmem:[%s2380_s3 + $0x8] sm:$0xff]  ;;  %v1705_v37 = vpack.c.bf16 %v229_v36, %v228_v35  ;;  %v230_v38 = vld [vmem:[%s2380_s3 + $0x20] sm:$0xff]  ;;  %v1687_v40 = vpack.c.bf16 %v103_v28, %v102_v27  ;;  %v104_v42 = vld [vmem:[%s2378_s1 + $0x50] sm:$0xff] }
  0x40   :  { %v1701_v34 = vpack.c.bf16 %v227_v32, %v226_v31  ;;  %v231_v39 = vld [vmem:[%s2380_s3 + $0x28] sm:$0xff]  ;;  %v105_v43 = vld [vmem:[%s2378_s1 + $0x58] sm:$0xff]  ;;  %v122_v44 = vld [vmem:[%s2378_s1 + $0xe0] sm:$0xff] }
  0x41   :  { %v123_v45 = vld [vmem:[%s2378_s1 + $0xe8] sm:$0xff]  ;;  %v1709_v46 = vpack.c.bf16 %v231_v39, %v230_v38  ;;  %v232_v47 = vld [vmem:[%s2380_s3 + $0x30] sm:$0xff]  ;;  %v233_v48 = vld [vmem:[%s2380_s3 + $0x38] sm:$0xff]  ;;  %v1691_v49 = vpack.c.bf16 %v105_v43, %v104_v42 }
  0x42   :  { %1680 = vmatpush3.bf16.msra.mxu0 %v1679_v19  ;;  %1702 = vmatprep.subr.bf16.mxu1 %v1701_v34  ;;  %v1693_v50 = vpack.c.bf16 %v123_v45, %v122_v44  ;;  %v106_v51 = vld [vmem:[%s2378_s1 + $0x60] sm:$0xff]  ;;  %v107_v52 = vld [vmem:[%s2378_s1 + $0x68] sm:$0xff]  ;;  %v124_v53 = vld [vmem:[%s2378_s1 + $0xf0] sm:$0xff]  ;;  %v1713_v55 = vpack.c.bf16 %v233_v48, %v232_v47 }
  0x43   :  { %1682 = vmatprep.subr.bf16.mxu0 %v1681_v20  ;;  %1704 = vmatpush3.bf16.msra.mxu1 %v1701_v34  ;;  %v125_v54 = vld [vmem:[%s2378_s1 + $0xf8] sm:$0xff]  ;;  %v234_v56 = vld [vmem:[%s2380_s3 + $0x40] sm:$0xff]  ;;  %v235_v57 = vld [vmem:[%s2380_s3 + $0x48] sm:$0xff]  ;;  %v1695_v58 = vpack.c.bf16 %v107_v52, %v106_v51  ;;  %v1887_v34 = vmov 0.0  }
  0x44   :  { %1706 = vmatprep.subr.bf16.mxu1 %v1705_v37  ;;  %v1697_v59 = vpack.c.bf16 %v125_v54, %v124_v53  ;;  %v108_v60 = vld [vmem:[%s2378_s1 + $0x70] sm:$0xff]  ;;  %v109_v61 = vld [vmem:[%s2378_s1 + $0x78] sm:$0xff]  ;;  %v1717_v62 = vpack.c.bf16 %v235_v57, %v234_v56  ;;  %v86_v3 = vld [vmem:[%s2377_s0] sm:$0xff]  ;;  %342 = vst [vmem:[#allocation2] sm:$0xf8] %v1887_v34 }
  0x45   :  { %v236_v63 = vld [vmem:[%s2380_s3 + $0x50] sm:$0xff]  ;;  %v237_v0 = vld [vmem:[%s2380_s3 + $0x58] sm:$0xff]  ;;  %v1699_v1 = vpack.c.bf16 %v109_v61, %v108_v60  ;;  %v91_v6 = vld [vmem:[%s2377_s0 + $0x28] sm:$0xff]  ;;  %343 = vst [vmem:[#allocation2 + $0x8] sm:$0xf8] %v1887_v34 }
  0x46   :  { %1684 = vmatpush3.bf16.msra.mxu0 %v1683_v26  ;;  %v1721_v2 = vpack.c.bf16 %v237_v0, %v236_v63  ;;  %v89_v4 = vld [vmem:[%s2377_s0 + $0x18] sm:$0xff]  ;;  %v88_v5 = vld [vmem:[%s2377_s0 + $0x10] sm:$0xff]  ;;  %v90_v7 = vld [vmem:[%s2377_s0 + $0x20] sm:$0xff]  ;;  %344 = vst [vmem:[#allocation2 + $0x10] sm:$0xf8] %v1887_v34 }
  0x47   :  { %1686 = vmatprep.subr.bf16.mxu0 %v1685_v29  ;;  %1708 = vmatpush3.bf16.msra.mxu1 %v1705_v37  ;;  %v93_v8 = vld [vmem:[%s2377_s0 + $0x38] sm:$0xff]  ;;  %v92_v9 = vld [vmem:[%s2377_s0 + $0x30] sm:$0xff]  ;;  %v238_v10 = vld [vmem:[%s2380_s3 + $0x60] sm:$0xff]  ;;  %345 = vst [vmem:[#allocation2 + $0x18] sm:$0xf8] %v1887_v34 }
  0x48   :  { %1710 = vmatprep.subr.bf16.mxu1 %v1709_v46  ;;  %v239_v11 = vld [vmem:[%s2380_s3 + $0x68] sm:$0xff]  ;;  %v240_v13 = vld [vmem:[%s2380_s3 + $0x70] sm:$0xff]  ;;  %v241_v14 = vld [vmem:[%s2380_s3 + $0x78] sm:$0xff]  ;;  %346 = vst [vmem:[#allocation2 + $0x20] sm:$0xf8] %v1887_v34 }
  0x49   :  { %v1725_v12 = vpack.c.bf16 %v239_v11, %v238_v10  ;;  %v1729_v15 = vpack.c.bf16 %v241_v14, %v240_v13  ;;  %v1507_v18 = vld [vmem:[%s2379_s2] ss:$0 sm:$0xff]  ;;  %347 = vst [vmem:[#allocation2 + $0x28] sm:$0xf8] %v1887_v34  ;;  %348 = vst [vmem:[#allocation2 + $0x30] sm:$0xf8] %v1887_v34 }
  0x4a   :  { %1688 = vmatpush3.bf16.msra.mxu0 %v1687_v40  ;;  %349 = vst [vmem:[#allocation2 + $0x38] sm:$0xf8] %v1887_v34  ;;  %v1508_v35 = vld [vmem:[%s2381_s4] ss:$0 sm:$0xff]  ;;  %v392_v11 = vld [vmem:[%s2382_s5 + $0x28] sm:$0xff] }
  0x4b   :  { %1690 = vmatprep.subr.bf16.mxu0 %v1689_v41  ;;  %1712 = vmatpush3.bf16.msra.mxu1 %v1709_v46  ;;  %v391_v10 = vld [vmem:[%s2382_s5 + $0x20] sm:$0xff] }
  0x4c   :  { %1714 = vmatprep.subr.bf16.mxu1 %v1713_v55 }
  0x4e   :  { %1692 = vmatpush3.bf16.msra.mxu0 %v1691_v49 }
  0x4f   :  { %1694 = vmatprep.subr.bf16.mxu0 %v1693_v50  ;;  %1716 = vmatpush3.bf16.msra.mxu1 %v1713_v55 }
  0x50   :  { %1718 = vmatprep.subr.bf16.mxu1 %v1717_v62 }
  0x52   :  { %1696 = vmatpush3.bf16.msra.mxu0 %v1695_v58 }
  0x53   :  { %1698 = vmatprep.subr.bf16.mxu0 %v1697_v59  ;;  %1720 = vmatpush3.bf16.msra.mxu1 %v1717_v62 }
  0x54   :  { %1722 = vmatprep.subr.bf16.mxu1 %v1721_v2 }
  0x56   :  { %1700 = vmatpush3.bf16.msra.mxu0 %v1699_v1 }
  0x57   :  { %1724 = vmatpush3.bf16.msra.mxu1 %v1721_v2 }
  0x58   :  { %1726 = vmatprep.subr.bf16.mxu1 %v1725_v12 }
  0x59   :  { %198 = vmatmul.mubr.f32.vlgmr.msra.gmra.mrb[0].mxu0 %v86_v3 }
  0x5a   :  { %202 = vmatprep.mubr.f32.mxu0 %v89_v4 }
  0x5b   :  { %1728 = vmatpush3.bf16.msra.mxu1 %v1725_v12  ;;  %v394_v12 = vld [vmem:[#allocation3 + $0x8] sm:$0xff] }
  0x5c   :  { %1730 = vmatprep.subr.bf16.mxu1 %v1729_v15 }
  0x5d   :  { %203 = vmatmul.mubr.f32.gmra.mrb[2].mxu0 %v88_v5 }
  0x5e   :  { %207 = vmatprep.mubr.f32.mxu0 %v91_v6  ;;  %v387_v6 = vld [vmem:[%s2382_s5] sm:$0xff] }
  0x5f   :  { %1732 = vmatpush3.bf16.msra.mxu1 %v1729_v15 }
  0x61   :  { %208 = vmatmul.mubr.f32.gmra.mrb[4].mxu0 %v90_v7  ;;  %v388_v7 = vld [vmem:[%s2382_s5 + $0x8] sm:$0xff] }
  0x62   :  { %212 = vmatprep.mubr.f32.mxu0 %v93_v8  ;;  %v389_v8 = vld [vmem:[%s2382_s5 + $0x10] sm:$0xff] }
  0x65   :  { %213 = vmatmul.mubr.f32.gmra.mrb[6].mxu0 %v92_v9  ;;  %v390_v9 = vld [vmem:[%s2382_s5 + $0x18] sm:$0xff] }
  0x66   :  { %601 = vmatprep.mubr.f32.mxu0 %v1887_v34 }
 0x12c   :  { %v1599_v16 = vpop.f32.mrb[0].mxu0 }
 0x12d   :  { %v1600_v17 = vpop.f32.mrb[1].mxu0 }
 0x12e   :  { %v1601_v19 = vadd.f32 %v1600_v17, %v1599_v16 }
 0x130   :  { %v1602_v20 = vpop.f32.mrb[2].mxu0  ;;  %v200_v21 = vadd.f32 %v1601_v19, %v1507_v18 }
 0x131   :  { %v1603_v22 = vpop.f32.mrb[3].mxu0 }
 0x132   :  { %v1604_v23 = vadd.f32 %v1603_v22, %v1602_v20  ;;  %vm218_vm0 = vcmp.gt.f32.partialorder %v200_v21, 1.0  ;;  %v401_v22 = vld [vmem:[#allocation3 + $0x40] sm:$0xff] }
 0x133   :  { %1663 = vmatprep.mubr.msk.f32.mxu1 %vm218_vm0, %v1886_v24 }
 0x134   :  { %v205_v25 = vadd.f32 %v1604_v23, %v1507_v18  ;;  %v1605_v26 = vpop.f32.mrb[4].mxu0 }
 0x135   :  { %v1606_v27 = vpop.f32.mrb[5].mxu0 }
 0x136   :  { %vm219_vm1 = vcmp.gt.f32.partialorder %v205_v25, 1.0  ;;  %v1607_v28 = vadd.f32 %v1606_v27, %v1605_v26  ;;  %v403_v25 = vld [vmem:[#allocation3 + $0x50] sm:$0xff]  ;;  %v402_v27 = vld [vmem:[#allocation3 + $0x48] sm:$0xff] }
 0x137   :  { %1664 = vmatmul.mubr.msk.f32.vlgmr.msra.gmra.mrb[0].mxu1 %vm219_vm1, %v1886_v24 }
 0x138   :  { %v210_v29 = vadd.f32 %v1607_v28, %v1507_v18  ;;  %v1608_v30 = vpop.f32.mrb[6].mxu0 }
 0x139   :  { %v1609_v31 = vpop.f32.mrb[7].mxu0 }
 0x13a   :  { %vm220_vm2 = vcmp.gt.f32.partialorder %v210_v29, 1.0  ;;  %v1610_v32 = vadd.f32 %v1609_v31, %v1608_v30  ;;  %v404_v29 = vld [vmem:[#allocation3 + $0x58] sm:$0xff]  ;;  %v405_v31 = vld [vmem:[#allocation3 + $0x60] sm:$0xff] }
 0x13b   :  { %1666 = vmatprep.mubr.msk.f32.mxu1 %vm220_vm2, %v1886_v24 }
 0x13c   :  { %v215_v33 = vadd.f32 %v1610_v32, %v1507_v18  ;;  %v407_v32 = vld [vmem:[#allocation3 + $0x70] sm:$0xff] }
 0x13e   :  { %vm221_vm3 = vcmp.gt.f32.partialorder %v215_v33, 1.0 }
 0x13f   :  { %1667 = vmatmul.mubr.msk.f32.gmra.mrb[2].mxu1 %vm221_vm3, %v1886_v24 }
 0x140   :  { %500 = vmatprep.mubr.f32.mxu1 %v1887_v34 }
 0x20a   :  { %v1665_v36 = vpop.f32.mrb[0].mxu1 }
 0x20b   :  { %v321_v37 = vadd.f32 %v1665_v36, %v1508_v35  ;;  %v315_v38 = vpop.f32.mrb[1].mxu1 }
 0x20c   :  { %v316_v39 = vadd.f32 %v1508_v35, %v315_v38 }
 0x20d   :  { %vm335_vm4 = vcmp.gt.f32.partialorder %v321_v37, 1.0  ;;  %v408_v37 = vld [vmem:[#allocation3 + $0x78] sm:$0xff] }
 0x20e   :  { %v339_v40 = vsel %vm335_vm4, 1.0, %v1887_v34  ;;  %vm334_vm5 = vcmp.gt.f32.partialorder %v316_v39, 1.0 }
 0x20f   :  { %v358_v41 = vrot.slane %v339_v40, 6  ;;  %v362_v42 = vrot.slane %v339_v40, 1  ;;  %v338_v43 = vsel %vm334_vm5, 1.0, %v1887_v34 }
 0x210   :  { %350 = vst [vmem:[#allocation2] sm:$0x7] %v338_v43  ;;  %v352_v44 = vrot.slane %v338_v43, 3  ;;  %v357_v45 = vrot.slane %v338_v43, 6 }
 0x211   :  { %364 = vst [vmem:[#allocation2 + $0x18] sm:$0x7] %v362_v42 }
 0x212   :  { %354 = vst [vmem:[#allocation2 + $0x8] sm:$0x7] %v352_v44  ;;  %v359_v46 = vsel %vm356_vm6, %v357_v45, %v358_v41  ;;  %v1668_v47 = vpop.f32.mrb[2].mxu1 }
 0x213   :  { %361 = vst [vmem:[#allocation2 + $0x10] sm:$0x7] %v359_v46  ;;  %v331_v48 = vadd.f32 %v1668_v47, %v1508_v35  ;;  %v325_v49 = vpop.f32.mrb[3].mxu1 }
 0x214   :  { %v326_v50 = vadd.f32 %v1508_v35, %v325_v49  ;;  %v406_v35 = vld [vmem:[#allocation3 + $0x68] sm:$0xff]  ;;  %v1888_v49 = vmov 1.0|1.0  }
 0x215   :  { %vm337_vm7 = vcmp.gt.f32.partialorder %v331_v48, 1.0  ;;  %v393_v48 = vld [vmem:[#allocation3] sm:$0xff] }
 0x216   :  { %v341_v51 = vsel %vm337_vm7, 1.0, %v1887_v34  ;;  %vm336_vm8 = vcmp.gt.f32.partialorder %v326_v50, 1.0 }
 0x217   :  { %v372_v52 = vrot.slane %v341_v51, 6  ;;  %v376_v53 = vrot.slane %v341_v51, 1  ;;  %v340_v54 = vsel %vm336_vm8, 1.0, %v1887_v34  ;;  %v2221_v1 = vld [vmem:[#allocation2] sm:$0xff]  ;;  %v398_v51 = vld [vmem:[#allocation3 + $0x28] sm:$0xff] }
 0x218   :  { %365 = vst [vmem:[#allocation2 + $0x20] sm:$0x7] %v340_v54  ;;  %v367_v55 = vrot.slane %v340_v54, 3  ;;  %v371_v56 = vrot.slane %v340_v54, 6  ;;  %v2207_v58 = vld [vmem:[#allocation2 + $0x18] sm:$0xff] }
 0x219   :  { %378 = vst [vmem:[#allocation2 + $0x38] sm:$0x7] %v376_v53  ;;  %v2215_v62 = vld [vmem:[#allocation2 + $0x8] sm:$0xff]  ;;  %v397_v53 = vld [vmem:[#allocation3 + $0x20] sm:$0xff] }
 0x21a   :  { %369 = vst [vmem:[#allocation2 + $0x28] sm:$0x7] %v367_v55  ;;  %v373_v57 = vsel %vm356_vm6, %v371_v56, %v372_v52  ;;  %v2223_v2 = vld [vmem:[#allocation2 + $0x10] sm:$0xff]  ;;  %v396_v55 = vld [vmem:[#allocation3 + $0x18] sm:$0xff] }
 0x21b   :  { %375 = vst [vmem:[#allocation2 + $0x30] sm:$0x7] %v373_v57  ;;  %v395_v57 = vld [vmem:[#allocation3 + $0x10] sm:$0xff] }
 0x21f   :  { %v2211_v60 = vld [vmem:[#allocation2 + $0x20] sm:$0xff] }
 0x220   :  { %v2209_v59 = vld [vmem:[#allocation2 + $0x38] sm:$0xff]  ;;  %v1735_v4 = vpack.c.bf16 %v2211_v60, %v2221_v1 }
 0x221   :  { %v1737_v61 = vpack.c.bf16 %v2209_v59, %v2207_v58  ;;  %v2217_v63 = vld [vmem:[#allocation2 + $0x28] sm:$0xff] }
 0x222   :  { %v1733_v0 = vpack.c.bf16 %v2217_v63, %v2215_v62  ;;  %v2225_v3 = vld [vmem:[#allocation2 + $0x30] sm:$0xff] }
 0x223   :  { %1738 = vmatprep.subr.bf16.mxu0 %v1737_v61  ;;  %v1739_v5 = vpack.c.bf16 %v2225_v3, %v2223_v2 }
 0x224   :  { %1734 = vmatprep.subr.bf16.mxu1 %v1733_v0  ;;  %v400_v0 = vld [vmem:[#allocation3 + $0x38] sm:$0xff] }
 0x225   :  { %1736 = vmatpush1.bf16.msra.mxu1 %v1735_v4  ;;  %1740 = vmatpush1.bf16.msra.mxu0 %v1739_v5  ;;  %v399_v5 = vld [vmem:[#allocation3 + $0x30] sm:$0xff] }
 0x228   :  { %1513 = vmatmul.mubr.msk.f32.vlgmr.msra.gmra.mrb[4].mxu1 %vm417_vm9, %v387_v6  ;;  %1519 = vmatmul.mubr.msk.f32.vlgmr.msra.gmra.mrb[8].mxu0 %vm417_vm9, %v387_v6 }
 0x229   :  { %506 = vmatprep.mubr.f32.mxu1 %v1887_v34  ;;  %607 = vmatprep.mubr.f32.mxu0 %v1887_v34 }
 0x22c   :  { %1514 = vmatmul.mubr.msk.f32.gmra.mrb[6].mxu1 %vm417_vm9, %v388_v7  ;;  %1520 = vmatmul.mubr.msk.f32.gmra.mrb[10].mxu0 %vm417_vm9, %v388_v7 }
 0x22d   :  { %512 = vmatprep.mubr.f32.mxu1 %v1887_v34  ;;  %613 = vmatprep.mubr.f32.mxu0 %v1887_v34 }
 0x230   :  { %1515 = vmatmul.mubr.msk.f32.gmra.mrb[8].mxu1 %vm417_vm9, %v389_v8  ;;  %1521 = vmatmul.mubr.msk.f32.gmra.mrb[12].mxu0 %vm417_vm9, %v389_v8  ;;  %v409_v8 = vld [vmem:[#allocation3 + $0x80] sm:$0xff] }
 0x231   :  { %518 = vmatprep.mubr.f32.mxu1 %v1887_v34  ;;  %619 = vmatprep.mubr.f32.mxu0 %v1887_v34 }
 0x234   :  { %1516 = vmatmul.mubr.msk.f32.gmra.mrb[10].mxu1 %vm417_vm9, %v390_v9  ;;  %1522 = vmatmul.mubr.msk.f32.gmra.mrb[14].mxu0 %vm417_vm9, %v390_v9  ;;  %v410_v9 = vld [vmem:[#allocation3 + $0x88] sm:$0xff] }
 0x235   :  { %524 = vmatprep.mubr.f32.mxu1 %v1887_v34  ;;  %625 = vmatprep.mubr.f32.mxu0 %v1887_v34 }
 0x238   :  { %1517 = vmatmul.mubr.msk.f32.gmra.mrb[12].mxu1 %vm417_vm9, %v391_v10  ;;  %1523 = vmatmul.mubr.msk.f32.gmra.mrb[16].mxu0 %vm417_vm9, %v391_v10 }
 0x239   :  { %530 = vmatprep.mubr.f32.mxu1 %v1887_v34  ;;  %631 = vmatprep.mubr.f32.mxu0 %v1887_v34 }
 0x23c   :  { %1518 = vmatmul.mubr.msk.f32.gmra.mrb[14].mxu1 %vm417_vm9, %v392_v11  ;;  %1524 = vmatmul.mubr.msk.f32.gmra.mrb[18].mxu0 %vm417_vm9, %v392_v11 }
 0x23d   :  { %910 = vmatprep.mubr.f32.mxu0 %v1887_v34 }
 0x2fb   :  { %v502_v13 = vpop.f32.mrb[4].mxu1  ;;  %v2272_v14 = vpop.f32.mrb[8].mxu0 }
 0x2fc   :  { %v504_v15 = vpop.f32.mrb[5].mxu1  ;;  %v605_v16 = vpop.f32.mrb[9].mxu0  ;;  %v503_v52 = vadd.f32 %v502_v13, %v393_v48  ;;  %v604_v4 = vadd.f32 %v2272_v14, %v395_v57 }
 0x2fd   :  { %v505_v17 = vadd.f32 %v504_v15, %v394_v12  ;;  %v606_v61 = vadd.f32 %v605_v16, %v396_v55  ;;  %v413_v16 = vld [vmem:[#allocation3 + $0xa0] sm:$0xff] }
 0x2fe   :  { %vm638_vm7 = vcmp.ge.f32.partialorder %v503_v52, 2.0 }
 0x2ff   :  { %vm639_vm10 = vcmp.ge.f32.partialorder %v505_v17, 2.0  ;;  %v508_v18 = vpop.f32.mrb[6].mxu1  ;;  %v2274_v19 = vpop.f32.mrb[10].mxu0  ;;  %v414_v17 = vld [vmem:[#allocation3 + $0xa8] sm:$0xff] }
 0x300   :  { %v510_v20 = vpop.f32.mrb[7].mxu1  ;;  %1529 = vmatprep.mubr.msk.f32.mxu1 %vm639_vm10, %v1886_v24  ;;  %v611_v21 = vpop.f32.mrb[11].mxu0  ;;  %v509_v56 = vadd.f32 %v508_v18, %v397_v53  ;;  %v610_v7 = vadd.f32 %v2274_v19, %v399_v5  ;;  %v1024_v53 = vld [vmem:[%s2384_s7] sm:$0xff]  ;;  %v1027_v5 = vld [vmem:[#allocation6 + $0x8] sm:$0xff] }
 0x301   :  { %v511_v54 = vadd.f32 %v510_v20, %v398_v51  ;;  %v612_v6 = vadd.f32 %v611_v21, %v400_v0  ;;  %v1025_v0 = vld [vmem:[%s2384_s7 + $0x8] sm:$0xff] }
 0x302   :  { %vm642_vm10 = vcmp.ge.f32.partialorder %v509_v56, 2.0 }
 0x303   :  { %v514_v23 = vpop.f32.mrb[8].mxu1  ;;  %v615_v26 = vpop.f32.mrb[12].mxu0  ;;  %vm643_vm8 = vcmp.ge.f32.partialorder %v511_v54, 2.0 }
 0x304   :  { %v516_v28 = vpop.f32.mrb[9].mxu1  ;;  %v617_v30 = vpop.f32.mrb[13].mxu0  ;;  %v515_v33 = vadd.f32 %v514_v23, %v401_v22  ;;  %v616_v36 = vadd.f32 %v615_v26, %v403_v25  ;;  %v412_v22 = vld [vmem:[#allocation3 + $0x98] sm:$0xff] }
 0x305   :  { %v517_v38 = vadd.f32 %v516_v28, %v402_v27  ;;  %v618_v40 = vadd.f32 %v617_v30, %v404_v29  ;;  %v415_v27 = vld [vmem:[#allocation3 + $0xb0] sm:$0xff]  ;;  %v416_v28 = vld [vmem:[#allocation3 + $0xb8] sm:$0xff] }
 0x306   :  { %vm646_vm11 = vcmp.ge.f32.partialorder %v515_v33, 2.0  ;;  %vm648_vm13 = vcmp.ge.f32.partialorder %v616_v36, 2.0 }
 0x307   :  { %v520_v39 = vpop.f32.mrb[10].mxu1  ;;  %v621_v41 = vpop.f32.mrb[14].mxu0  ;;  %vm647_vm15 = vcmp.ge.f32.partialorder %v517_v38, 2.0  ;;  %vm649_vm2 = vcmp.ge.f32.partialorder %v618_v40, 2.0 }
 0x308   :  { %v521_v42 = vadd.f32 %v520_v39, %v405_v31  ;;  %v522_v43 = vpop.f32.mrb[11].mxu1  ;;  %v622_v44 = vadd.f32 %v621_v41, %v407_v32  ;;  %v623_v45 = vpop.f32.mrb[15].mxu0  ;;  %v836_v32 = vld [vmem:[%s2386_s9] sm:$0xff] }
 0x309   :  { %v523_v46 = vadd.f32 %v522_v43, %v406_v35  ;;  %v624_v47 = vadd.f32 %v623_v45, %v408_v37  ;;  %v837_v37 = vld [vmem:[%s2386_s9 + $0x8] sm:$0xff] }
 0x30a   :  { %vm650_vm12 = vcmp.ge.f32.partialorder %v521_v42, 2.0  ;;  %vm652_vm14 = vcmp.ge.f32.partialorder %v622_v44, 2.0 }
 0x30b   :  { %vm1743_vm0 = vmpackc.low %vm650_vm12, %vm646_vm11  ;;  %vm651_vm1 = vcmp.ge.f32.partialorder %v523_v46, 2.0  ;;  %vm653_vm3 = vcmp.ge.f32.partialorder %v624_v47, 2.0  ;;  %vm641_vm11 = vcmp.ge.f32.partialorder %v606_v61, 2.0  ;;  %vm640_vm12 = vcmp.ge.f32.partialorder %v604_v4, 2.0  ;;  %v526_v10 = vpop.f32.mrb[12].mxu1  ;;  %v627_v11 = vpop.f32.mrb[16].mxu0 }
 0x30c   :  { %vm1741_vm4 = vmpackc.low %vm651_vm1, %vm647_vm15  ;;  %v527_v12 = vadd.f32 %v526_v10, %v409_v8  ;;  %v528_v13 = vpop.f32.mrb[13].mxu1  ;;  %v629_v14 = vpop.f32.mrb[17].mxu0  ;;  %v1026_v4 = vld [vmem:[#allocation6] sm:$0xff] }
 0x30d   :  { %1742 = vmatprep.subr.msk.bf16.mxu1 %vm1741_vm4, %v1888_v49  ;;  %vm2278_vm5 = vmpackc.low %vm652_vm14, %vm648_vm13  ;;  %vm645_vm13 = vcmp.ge.f32.partialorder %v612_v6, 2.0  ;;  %vm644_vm14 = vcmp.ge.f32.partialorder %v610_v7, 2.0  ;;  %v529_v15 = vadd.f32 %v528_v13, %v410_v9  ;;  %v630_v25 = vadd.f32 %v629_v14, %v412_v22  ;;  %v1030_v10 = vld [vmem:[#allocation6 + $0x20] sm:$0xff] }
 0x30e   :  { %1744 = vmatpush1.bf16.xpose.msk.msra.mxu1 %vm1743_vm0, %v1888_v49  ;;  %vm1745_vm6 = vmpackc.low %vm653_vm3, %vm649_vm2  ;;  %vm654_vm15 = vcmp.ge.f32.partialorder %v527_v12, 2.0  ;;  %v1031_v12 = vld [vmem:[#allocation6 + $0x28] sm:$0xff] }
 0x30f   :  { %1746 = vmatprep.subr.msk.bf16.mxu1 %vm1745_vm6, %v1888_v49  ;;  %v532_v18 = vpop.f32.mrb[14].mxu1  ;;  %vm655_vm0 = vcmp.ge.f32.partialorder %v529_v15, 2.0  ;;  %v633_v26 = vpop.f32.mrb[18].mxu0  ;;  %vm657_vm6 = vcmp.ge.f32.partialorder %v630_v25, 2.0 }
 0x310   :  { %v533_v19 = vadd.f32 %v532_v18, %v413_v16  ;;  %v534_v20 = vpop.f32.mrb[15].mxu1  ;;  %v635_v29 = vpop.f32.mrb[19].mxu0  ;;  %v634_v30 = vadd.f32 %v633_v26, %v415_v27  ;;  %v1028_v18 = vld [vmem:[#allocation6 + $0x10] sm:$0xff] }
 0x311   :  { %v535_v21 = vadd.f32 %v534_v20, %v414_v17  ;;  %v636_v31 = vadd.f32 %v635_v29, %v416_v28 }
 0x312   :  { %vm658_vm1 = vcmp.ge.f32.partialorder %v533_v19, 2.0 }
 0x313   :  { %vm1751_vm2 = vmpackc.low %vm658_vm1, %vm654_vm15  ;;  %vm659_vm3 = vcmp.ge.f32.partialorder %v535_v21, 2.0 }
 0x314   :  { %vm1749_vm4 = vmpackc.low %vm659_vm3, %vm655_vm0 }
 0x315   :  { %1530 = vmatmul.mubr.msk.f32.vlgmr.msra.gmra.mrb[16].mxu1 %vm638_vm7, %v1886_v24  ;;  %1750 = vmatprep.subr.msk.bf16.mxu0 %vm1749_vm4, %v1888_v49  ;;  %vm660_vm7 = vcmp.ge.f32.partialorder %v634_v30, 2.0 }
 0x316   :  { %1531 = vmatprep.mubr.msk.f32.mxu1 %vm643_vm8, %v1886_v24  ;;  %1748 = vmatpush1.bf16.xpose.msk.msra.mxu1 %vm2278_vm5, %v1888_v49  ;;  %vm661_vm8 = vcmp.ge.f32.partialorder %v636_v31, 2.0 }
 0x317   :  { %1752 = vmatpush1.bf16.msk.msra.mxu0 %vm1751_vm2, %v1888_v49 }
 0x319   :  { %1532 = vmatmul.mubr.msk.f32.gmra.mrb[18].mxu1 %vm642_vm10, %v1886_v24 }
 0x31a   :  { %1537 = vmatprep.mubr.msk.f32.mxu1 %vm641_vm11, %v1886_v24  ;;  %vm1753_vm11 = vmpackc.low %vm661_vm8, %vm657_vm6 }
 0x31b   :  { %1754 = vmatprep.subr.msk.bf16.mxu0 %vm1753_vm11, %v1888_v49 }
 0x31d   :  { %1538 = vmatmul.mubr.msk.f32.vlgmr.msra.gmra.mrb[16].mxu1 %vm640_vm12, %v1886_v24 }
 0x31e   :  { %1539 = vmatprep.mubr.msk.f32.mxu1 %vm645_vm13, %v1886_v24 }
 0x321   :  { %1540 = vmatmul.mubr.msk.f32.gmra.mrb[18].mxu1 %vm644_vm14, %v1886_v24  ;;  %v411_v24 = vld [vmem:[#allocation3 + $0x90] sm:$0xff] }
 0x322   :  { %1104 = vmatprep.mubr.f32.mxu1 %v1887_v34  ;;  %v628_v23 = vadd.f32 %v627_v11, %v411_v24  ;;  %v1029_v24 = vld [vmem:[#allocation6 + $0x18] sm:$0xff] }
 0x324   :  { %vm656_vm5 = vcmp.ge.f32.partialorder %v628_v23, 2.0 }
 0x325   :  { %vm1755_vm10 = vmpackc.low %vm660_vm7, %vm656_vm5 }
 0x3f0   :  { %v827_v33 = vpop.f32.mrb[16].mxu1 }
 0x3f1   :  { %v838_v35 = vmul.f32 %v836_v32, %v827_v33  ;;  %v829_v36 = vpop.f32.mrb[17].mxu1  ;;  %v1032_v32 = vld [vmem:[#allocation6 + $0x30] sm:$0xff] }
 0x3f3   :  { %1545 = vmatmul.mubr.msk.f32.vlgmr.msra.gmra.mrb[20].mxu0 %vm417_vm9, %v838_v35 }
 0x3f4   :  { %v832_v38 = vpop.f32.mrb[18].mxu1  ;;  %916 = vmatprep.mubr.f32.mxu0 %v1887_v34  ;;  %1756 = vmatpush1.bf16.msk.msra.mxu0 %vm1755_vm10, %v1888_v49 }
 0x3f5   :  { %v839_v39 = vmul.f32 %v837_v37, %v832_v38  ;;  %v834_v40 = vpop.f32.mrb[19].mxu1 }
 0x3f7   :  { %1546 = vmatmul.mubr.msk.f32.gmra.mrb[22].mxu0 %vm417_vm9, %v839_v39 }
 0x3f8   :  { %987 = vmatprep.mubr.f32.mxu0 %v1887_v34 }
 0x3fb   :  { %1551 = vmatmul.mubr.msk.f32.vlgmr.msra.gmra.mrb[24].mxu0 %vm417_vm9, %v838_v35 }
 0x3fc   :  { %993 = vmatprep.mubr.f32.mxu0 %v1887_v34 }
 0x3ff   :  { %1552 = vmatmul.mubr.msk.f32.gmra.mrb[26].mxu0 %vm417_vm9, %v839_v39 }
 0x400   :  { %1181 = vmatprep.mubr.f32.mxu0 %v1887_v34 }
 0x4c6   :  { %v912_v41 = vpop.f32.mrb[20].mxu0 }
 0x4c7   :  { %v914_v42 = vpop.f32.mrb[21].mxu0  ;;  %v1000_v43 = vmul.f32 0.125, %v912_v41 }
 0x4c8   :  { %v1001_v44 = vmul.f32 0.125, %v914_v42 }
 0x4c9   :  { %vm1008_vm12 = vcmp.ge.f32.partialorder %v1000_v43, 1.0 }
 0x4ca   :  { %v918_v45 = vpop.f32.mrb[22].mxu0  ;;  %vm1009_vm14 = vcmp.ge.f32.partialorder %v1001_v44, 1.0 }
 0x4cb   :  { %v1004_v46 = vmul.f32 0.125, %v918_v45  ;;  %v920_v47 = vpop.f32.mrb[23].mxu0 }
 0x4cc   :  { %v1005_v48 = vmul.f32 0.125, %v920_v47 }
 0x4cd   :  { %vm1012_vm13 = vcmp.ge.f32.partialorder %v1004_v46, 1.0 }
 0x4ce   :  { %vm1759_vm15 = vmpackc.low %vm1012_vm13, %vm1008_vm12  ;;  %vm1013_vm0 = vcmp.ge.f32.partialorder %v1005_v48, 1.0  ;;  %v989_v50 = vpop.f32.mrb[24].mxu0 }
 0x4cf   :  { %vm1757_vm1 = vmpackc.low %vm1013_vm0, %vm1009_vm14  ;;  %v991_v51 = vpop.f32.mrb[25].mxu0  ;;  %v1002_v52 = vmul.f32 0.125, %v989_v50  ;;  %v1033_v50 = vld [vmem:[#allocation6 + $0x38] sm:$0xff] }
 0x4d0   :  { %1758 = vmatprep.subr.msk.bf16.mxu1 %vm1757_vm1, %v1888_v49  ;;  %v1003_v54 = vmul.f32 0.125, %v991_v51 }
 0x4d1   :  { %1760 = vmatpush1.bf16.msk.msra.mxu1 %vm1759_vm15, %v1888_v49  ;;  %vm1010_vm2 = vcmp.ge.f32.partialorder %v1002_v52, 1.0 }
 0x4d2   :  { %v995_v55 = vpop.f32.mrb[26].mxu0  ;;  %vm1011_vm4 = vcmp.ge.f32.partialorder %v1003_v54, 1.0 }
 0x4d3   :  { %v1006_v56 = vmul.f32 0.125, %v995_v55  ;;  %v997_v57 = vpop.f32.mrb[27].mxu0 }
 0x4d4   :  { %v1007_v61 = vmul.f32 0.125, %v997_v57  ;;  %1557 = vmatmul.mubr.msk.f32.vlgmr.msra.gmra.mrb[20].mxu1 %vm417_vm9, %v1024_v53 }
 0x4d5   :  { %vm1014_vm3 = vcmp.ge.f32.partialorder %v1006_v56, 1.0  ;;  %1110 = vmatprep.mubr.f32.mxu1 %v1887_v34 }
 0x4d6   :  { %vm1763_vm5 = vmpackc.low %vm1014_vm3, %vm1010_vm2  ;;  %vm1015_vm6 = vcmp.ge.f32.partialorder %v1007_v61, 1.0 }
 0x4d7   :  { %vm1761_vm7 = vmpackc.low %vm1015_vm6, %vm1011_vm4 }
 0x4d8   :  { %1558 = vmatmul.mubr.msk.f32.gmra.mrb[22].mxu1 %vm417_vm9, %v1025_v0  ;;  %1762 = vmatprep.subr.msk.bf16.mxu0 %vm1761_vm7, %v1888_v49 }
 0x4d9   :  { %1764 = vmatpush1.bf16.msk.msra.mxu0 %vm1763_vm5, %v1888_v49  ;;  %1390 = vmatprep.mubr.f32.mxu1 %v1887_v34 }
 0x4dc   :  { %1563 = vmatmul.mubr.msk.f32.vlgmr.msra.gmra.mrb[28].mxu0 %vm417_vm9, %v1024_v53 }
 0x4dd   :  { %1187 = vmatprep.mubr.f32.mxu0 %v1887_v34 }
 0x4e0   :  { %1564 = vmatmul.mubr.msk.f32.gmra.mrb[30].mxu0 %vm417_vm9, %v1025_v0 }
 0x5a7   :  { %v1106_v6 = vpop.f32.mrb[20].mxu1 }
 0x5a8   :  { %v1107_v7 = vadd.f32 %v1106_v6, %v1026_v4  ;;  %v1108_v8 = vpop.f32.mrb[21].mxu1 }
 0x5a9   :  { %v1109_v9 = vadd.f32 %v1108_v8, %v1027_v5 }
 0x5aa   :  { %v1194_v11 = vmul.f32 0.5, %v1107_v7 }
 0x5ab   :  { %v1195_v13 = vmul.f32 0.5, %v1109_v9  ;;  %v1112_v14 = vpop.f32.mrb[22].mxu1 }
 0x5ac   :  { %vm1202_vm8 = vcmp.ge.f32.partialorder %v1194_v11, 1.0  ;;  %v1113_v49 = vadd.f32 %v1112_v14, %v1030_v10  ;;  %v1114_v15 = vpop.f32.mrb[23].mxu1 }
 0x5ad   :  { %v1210_v16 = vsel %vm1202_vm8, 1.0, %v1887_v34  ;;  %vm1203_vm10 = vcmp.ge.f32.partialorder %v1195_v13, 1.0  ;;  %v1115_v17 = vadd.f32 %v1114_v15, %v1031_v12 }
 0x5ae   :  { %v1218_v19 = vsub.f32 1.0, %v1210_v16  ;;  %v1211_v20 = vsel %vm1203_vm10, 1.0, %v1887_v34  ;;  %v1198_v21 = vmul.f32 0.5, %v1113_v49 }
 0x5af   :  { %v1219_v22 = vsub.f32 1.0, %v1211_v20  ;;  %v1199_v23 = vmul.f32 0.5, %v1115_v17  ;;  %v1183_v25 = vpop.f32.mrb[28].mxu0 }
 0x5b0   :  { %v1226_v26 = vmul.f32 %v1218_v19, %v1194_v11  ;;  %vm1206_vm11 = vcmp.ge.f32.partialorder %v1198_v21, 1.0  ;;  %v1184_v27 = vadd.f32 %v1183_v25, %v1028_v18  ;;  %v1185_v28 = vpop.f32.mrb[29].mxu0 }
 0x5b1   :  { %v1227_v29 = vmul.f32 %v1219_v22, %v1195_v13  ;;  %v1214_v30 = vsel %vm1206_vm11, 1.0, %v1887_v34  ;;  %vm1207_vm12 = vcmp.ge.f32.partialorder %v1199_v23, 1.0  ;;  %v1186_v31 = vadd.f32 %v1185_v28, %v1029_v24 }
 0x5b2   :  { %v1234_v33 = vadd.f32 %v1226_v26, %v1210_v16  ;;  %v1222_v35 = vsub.f32 1.0, %v1214_v30  ;;  %v1215_v36 = vsel %vm1207_vm12, 1.0, %v1887_v34  ;;  %v1196_v37 = vmul.f32 0.5, %v1184_v27 }
 0x5b3   :  { %v1235_v38 = vadd.f32 %v1227_v29, %v1211_v20  ;;  %v1223_v39 = vsub.f32 1.0, %v1215_v36  ;;  %v1197_v40 = vmul.f32 0.5, %v1186_v31  ;;  %v1189_v41 = vpop.f32.mrb[30].mxu0 }
 0x5b4   :  { %v1242_v42 = vmul.f32 0.5, %v1234_v33  ;;  %v1230_v43 = vmul.f32 %v1222_v35, %v1198_v21  ;;  %vm1204_vm13 = vcmp.ge.f32.partialorder %v1196_v37, 1.0  ;;  %v1190_v44 = vadd.f32 %v1189_v41, %v1032_v32  ;;  %v1191_v45 = vpop.f32.mrb[31].mxu0  ;;  %v1289_v41 = vld [vmem:[#allocation8 + $0x28] sm:$0xff] }
 0x5b5   :  { %v1243_v46 = vmul.f32 0.5, %v1235_v38  ;;  %v1231_v47 = vmul.f32 %v1223_v39, %v1199_v23  ;;  %v1212_v48 = vsel %vm1204_vm13, 1.0, %v1887_v34  ;;  %vm1205_vm14 = vcmp.ge.f32.partialorder %v1197_v40, 1.0  ;;  %v1285_v39 = vld [vmem:[#allocation8 + $0x8] sm:$0xff] }
 0x5b6   :  { %vm1250_vm15 = vcmp.ge.f32.partialorder %v1242_v42, 1.0  ;;  %v1238_v51 = vadd.f32 %v1230_v43, %v1214_v30  ;;  %v1220_v52 = vsub.f32 1.0, %v1212_v48  ;;  %v1213_v53 = vsel %vm1205_vm14, 1.0, %v1887_v34  ;;  %v1291_v42 = vld [vmem:[#allocation8 + $0x38] sm:$0xff] }
 0x5b7   :  { %vm1251_vm0 = vcmp.ge.f32.partialorder %v1243_v46, 1.0  ;;  %v1239_v54 = vadd.f32 %v1231_v47, %v1215_v36  ;;  %v1221_v55 = vsub.f32 1.0, %v1213_v53  ;;  %v1200_v56 = vmul.f32 0.5, %v1190_v44  ;;  %v1287_v43 = vld [vmem:[#allocation8 + $0x18] sm:$0xff] }
 0x5b8   :  { %v1246_v57 = vmul.f32 0.5, %v1238_v51  ;;  %v1228_v61 = vmul.f32 %v1220_v52, %v1196_v37  ;;  %v1192_v0 = vadd.f32 %v1191_v45, %v1033_v50  ;;  %v1258_v4 = vsel %vm1250_vm15, 1.0, %v1887_v34  ;;  %v1286_v51 = vld [vmem:[#allocation8 + $0x10] sm:$0xff] }
 0x5b9   :  { %v1247_v5 = vmul.f32 0.5, %v1239_v54  ;;  %v1229_v6 = vmul.f32 %v1221_v55, %v1197_v40  ;;  %vm1208_vm1 = vcmp.ge.f32.partialorder %v1200_v56, 1.0  ;;  %v1259_v7 = vsel %vm1251_vm0, 1.0, %v1887_v34  ;;  %v1288_v40 = vld [vmem:[#allocation8 + $0x20] sm:$0xff] }
 0x5ba   :  { %vm1254_vm2 = vcmp.ge.f32.partialorder %v1246_v57, 1.0  ;;  %v1236_v8 = vadd.f32 %v1228_v61, %v1212_v48  ;;  %v1216_v9 = vsel %vm1208_vm1, 1.0, %v1887_v34  ;;  %v1201_v10 = vmul.f32 0.5, %v1192_v0  ;;  %v1300_v57 = vld [vmem:[%s2387_s10] sm:$0x3]  ;;  %s1890_s10 = smov [#allocation9]  }
 0x5bb   :  { %v1262_v11 = vsel %vm1254_vm2, 1.0, %v1887_v34  ;;  %vm1255_vm3 = vcmp.ge.f32.partialorder %v1247_v5, 1.0  ;;  %v1224_v12 = vsub.f32 1.0, %v1216_v9  ;;  %v1237_v13 = vadd.f32 %v1229_v6, %v1213_v53  ;;  %v1301_v6 = vld [vmem:[%s2389_s12] sm:$0xf]  ;;  %s1497_s12 = sshll.u32 %s1890_s10, 4  ;;  %s1498_s12 = int_to_ptr.vmem [resolvable:$true] %s1497_s12 }
 0x5bc   :  { %v1263_v14 = vsel %vm1255_vm3, 1.0, %v1887_v34  ;;  %v1244_v49 = vmul.f32 0.5, %v1236_v8  ;;  %vm1209_vm4 = vcmp.ge.f32.partialorder %v1201_v10, 1.0  ;;  %v1266_v15 = vadd.f32 %v1258_v4, %v2221_v1  ;;  %s1853_s0 = scalar_lea.vmem %s1498_s12, 128  ;;  %p1858_p11 = scmp.lt.s32.totalorder %s1498_s12, %s1498_s12 }
 0x5bd   :  { %v1232_v16 = vmul.f32 %v1224_v12, %v1200_v56  ;;  %v1217_v17 = vsel %vm1209_vm4, 1.0, %v1887_v34  ;;  %v1245_v18 = vmul.f32 0.5, %v1237_v13  ;;  %v1267_v19 = vadd.f32 %v1259_v7, %v2215_v62  ;;  %p1854_p10 = scmp.ne.s32.totalorder %s1498_s12, %s1853_s0  ;;  %p1859_p12 = scmp.lt.s32.totalorder %s1853_s0, %s1853_s0 }
 0x5be   :  { %v1225_v20 = vsub.f32 1.0, %v1217_v17  ;;  %vm1252_vm5 = vcmp.ge.f32.partialorder %v1244_v49, 1.0  ;;  %v1270_v21 = vadd.f32 %v1262_v11, %v2211_v60  ;;  %v1271_v24 = vadd.f32 %v1263_v14, %v2217_v63 }
 0x5bf   :  { %v1240_v22 = vadd.f32 %v1232_v16, %v1216_v9  ;;  %vm1253_vm6 = vcmp.ge.f32.partialorder %v1245_v18, 1.0  ;;  %v1260_v23 = vsel %vm1252_vm5, 1.0, %v1887_v34  ;;  %v1274_v25 = vadd.f32 %v1267_v19, %v1266_v15  ;;  %p1860_p13 = por %p1859_p12, %p1858_p11 }
 0x5c0   :  { %v1233_v26 = vmul.f32 %v1225_v20, %v1201_v10  ;;  %v1261_v1 = vsel %vm1253_vm6, 1.0, %v1887_v34  ;;  %v1268_v27 = vadd.f32 %v1260_v23, %v2223_v2  ;;  %v1279_v28 = vadd.f32 %v1271_v24, %v1270_v21 }
 0x5c1   :  { %v1248_v29 = vmul.f32 0.5, %v1240_v22  ;;  %v1269_v62 = vadd.f32 %v1261_v1, %v2207_v58  ;;  %v1284_v58 = vld [vmem:[#allocation8] sm:$0xff]  ;;  %v1303_v0 = vlaneseq  ;;  %v1889_v11 = vmov 1983009808   ;;  %p1861_p0 = pnand %p1860_p13, %p1854_p10 }
 0x5c2   :  { %v1241_v30 = vadd.f32 %v1233_v26, %v1217_v17  ;;  %v1275_v31 = vadd.f32 %v1274_v25, %v1268_v27  ;;  %v1475_v12 = vunpack.c.l.s4 %v1889_v11 }
 0x5c3   :  { %vm1256_vm7 = vcmp.ge.f32.partialorder %v1248_v29, 1.0  ;;  %v1304_v4 = vshrl.u32 %v1303_v0, 7 }
 0x5c4   :  { %v1249_v60 = vmul.f32 0.5, %v1241_v30  ;;  %v1276_v32 = vadd.f32 %v1275_v31, %v1269_v62  ;;  %v1264_v63 = vsel %vm1256_vm7, 1.0, %v1887_v34  ;;  %v1476_v17 = vunpack.c.0.s8 %v1475_v12 }
 0x5c5   :  { %v1272_v33 = vadd.f32 %v1264_v63, %v2225_v3  ;;  %v1290_v3 = vld [vmem:[#allocation8 + $0x30] sm:$0xff]  ;;  %v1305_v5 = vsub.s32 0, %v1304_v4  ;;  %v1309_v7 = vsub.s32 1, %v1304_v4  ;;  %v1313_v9 = vsub.s32 2, %v1304_v4 }
 0x5c6   :  { %1277 = vadd.xlane.f32.xlu0 %v1276_v32  ;;  %vm1257_vm8 = vcmp.ge.f32.partialorder %v1249_v60, 1.0  ;;  %v1317_v13 = vsub.s32 3, %v1304_v4  ;;  %v1479_v22 = vsub.s32 %v1476_v17, %v1304_v4 }
 0x5c7   :  { %v1265_v35 = vsel %vm1257_vm8, 1.0, %v1887_v34  ;;  %v1280_v36 = vadd.f32 %v1279_v28, %v1272_v33  ;;  %v1306_v8 = vrot.slane %v1301_v6, %v1305_v5  ;;  %v1310_v10 = vrot.slane %v1301_v6, %v1309_v7 }
 0x5c8   :  { %v1273_v2 = vadd.f32 %v1265_v35, %v2209_v59  ;;  %v1318_v18 = vrot.slane %v1301_v6, %v1317_v13 }
 0x5ca   :  { %v1281_v37 = vadd.f32 %v1280_v36, %v1273_v2 }
 0x5cc   :  { %1282 = vadd.xlane.f32.xlu0 %v1281_v37 }
 0x653   :  { %v1278_v38 = vpop.xlane.xlu0 %1277 }
 0x654   :  { %v1292_v44 = vmul.f32 %v1284_v58, %v1278_v38  ;;  %v1293_v46 = vmul.f32 %v1285_v39, %v1278_v38  ;;  %v1295_v52 = vmul.f32 %v1287_v43, %v1278_v38  ;;  %v1294_v56 = vmul.f32 %v1286_v51, %v1278_v38 }
 0x659   :  { %v1283_v45 = vpop.xlane.xlu0 %1282 }
 0x65a   :  { %v1296_v47 = vmul.f32 %v1288_v40, %v1283_v45  ;;  %v1297_v48 = vmul.f32 %v1289_v41, %v1283_v45  ;;  %v1299_v50 = vmul.f32 %v1291_v42, %v1283_v45  ;;  %v1298_v54 = vmul.f32 %v1290_v3, %v1283_v45 }
 0x65c   :  { %v1767_v53 = vpack.c.bf16 %v1296_v47, %v1292_v44  ;;  %v1765_v59 = vpack.c.bf16 %v1297_v48, %v1293_v46  ;;  %v1769_v55 = vpack.c.bf16 %v1299_v50, %v1295_v52  ;;  %v1771_v61 = vpack.c.bf16 %v1298_v54, %v1294_v56 }
 0x65e   :  { %1766 = vmatprep.subr.bf16.mxu1 %v1765_v59 }
 0x65f   :  { %1768 = vmatpush1.bf16.msra.mxu1 %v1767_v53 }
 0x660   :  { %1770 = vmatprep.subr.bf16.mxu1 %v1769_v55 }
 0x662   :  { %1565 = vmatmul.mubr.msk.f32.vlgmr.msra.gmra.mrb[24].mxu1 %vm417_vm9, %v1300_v57 }
 0x663   :  { %1772 = vmatpush1.bf16.msra.mxu1 %v1771_v61  ;;  %1461 = vmatprep.mubr.f32.mxu1 %v1887_v34  ;;  %v1314_v34 = vrot.slane %v1301_v6, %v1313_v9 }
 0x666   :  { %1566 = vmatmul.mubr.msk.f32.vlgmr.msra.gmra.mrb[26].mxu1 %vm417_vm9, %v1300_v57 }
 0x735   :  { %v1392_v14 = vpop.f32.mrb[24].mxu1 }
 0x736   :  { %v1393_v49 = vadd.f32 %v1392_v14, %v1306_v8  ;;  %v1394_v15 = vpop.f32.mrb[25].mxu1 }
 0x737   :  { %v1395_v16 = vadd.f32 %v1394_v15, %v1310_v10 }
 0x739   :  { %v1472_v19 = vcombine.low %v1393_v49, %v1395_v16  ;;  %v1463_v20 = vpop.f32.mrb[26].mxu1 }
 0x73a   :  { %v1464_v21 = vadd.f32 %v1463_v20, %v1314_v34  ;;  %v1465_v24 = vpop.f32.mrb[27].mxu1 }
 0x73b   :  { %v1466_v23 = vadd.f32 %v1465_v24, %v1318_v18  ;;  %v1480_v26 = vrot.slane %v1472_v19, %v1479_v22 }
 0x73d   :  { %v1473_v25 = vcombine.low %v1464_v21, %v1466_v23 }
 0x73f   :  { %v1487_v1 = vrot.slane %v1473_v25, %v1479_v22 }
 0x741   :  { %v1488_v27 = vcombine.low %v1480_v26, %v1487_v1 }
 0x743   :  { %1490 = vst [vmem:[#allocation9] sm:$0xff] %v1488_v27 }
 0x744   :  { %1864 = shalt.err (!%p1861_p0)
}
 0x745   :  { %s1865_s3 = scalar_lea.hbm %s2390_s13, 128 }
 0x746   :  { %p1866_p1 = scmp.ne.s32.totalorder %s2390_s13, %s1865_s3  ;;  %p1869_p2 = scmp.lt.u32.totalorder %s1865_s3, %s2390_s13 }
 0x748   :  { %p1871_p3 = pnand %p1869_p2, %p1866_p1 }
 0x74a   :  { %1874 = shalt.err (!%p1871_p3)
}
 0x74b   :  { %1500 = dma.vmem_to_hbm [thread:$0]  %s1498_s12, 128, %s2390_s13, [#allocation5]  }
 0x74c   :  { %1879 = dma.done.wait [#allocation5], 128  }
 0x74d   :  { %1880 = vsyncadd [#allocation5], 4294967168 }
 0x74e   :  { %1504 = vsyncpa [#allocation4], 1 }
 0x74f   :  { %1505 = vsyncpa [#allocation7], 1 }
 0x750   :  { %1506 = vsyncpa [#allocation5], 1 }

</bundles_post_ra>
